<compile_context>
chip_gen: v6e
topology: v6e:2x2x1
jax: 0.10.0
libtpu: 0.0.40
codegen_flags: <defaults>
</compile_context>

<pallas_src>
import functools

import jax
import jax.numpy as jnp
from jax import lax
from jax.experimental import pallas as pl
from jax.experimental.pallas import tpu as pltpu


def _round_up(x, m):
    return ((x + m - 1) // m) * m


def _double_conv_kernel(x_ref, m_ref, w1_ref, b1_ref, w2_ref, b2_ref, o_ref, *, G, TH):
    """One grid step: G vertically stacked padded slabs -> G*TH output rows.

    x_ref  : (G*(TH+4), K1)  stacked slabs; each slab carries its own 2-row
                             top/bottom context (zero pad at image edges), so
                             conv windows for needed rows never cross slabs.
    m_ref  : (G*(TH+4), 1)   f32 0/1 mask = conv2's zero ROW padding (also kills
                             slab-straddling junk rows of conv1).
    w1_ref : (3, K1, L)      banded conv1 weights (kw taps + zero COLUMN padding
                             + BN1 scale folded in), one matrix per kh tap.
    b1_ref : (1, L)          conv1 bias + BN1 bias folded, tiled over lanes (f32).
    w2_ref : (3, L, L)       banded conv2 weights (BN2 scale folded in).
    b2_ref : (1, L)
    o_ref  : (G*TH, L)       lane-dense output rows (junk rows dropped).
    """
    R = TH + 4
    M1 = G * R - 2          # conv1 rows (incl. the +-1 halo rows conv2 needs)
    M2 = M1 - 2             # conv2 rows

    x = x_ref[...]

    # ---- conv1 + BN1 + ReLU: 3 full-width banded MXU matmuls.
    # Accumulator initialised from the kh=0 tap plus the broadcast bias.
    acc1 = jnp.dot(x[0:M1], w1_ref[0], preferred_element_type=jnp.float32) + b1_ref[...]
    acc1 = acc1 + jnp.dot(x[1:M1 + 1], w1_ref[1], preferred_element_type=jnp.float32)
    acc1 = acc1 + jnp.dot(x[2:M1 + 2], w1_ref[2], preferred_element_type=jnp.float32)
    # ReLU, then conv2's zero row padding (and slab-boundary junk) via the mask.
    y1 = (jnp.maximum(acc1, 0.0) * m_ref[0:M1]).astype(w2_ref.dtype)

    # ---- conv2 + BN2 + ReLU.
    acc2 = jnp.dot(y1[0:M2], w2_ref[0], preferred_element_type=jnp.float32) + b2_ref[...]
    acc2 = acc2 + jnp.dot(y1[1:M2 + 1], w2_ref[1], preferred_element_type=jnp.float32)
    acc2 = acc2 + jnp.dot(y1[2:M2 + 2], w2_ref[2], preferred_element_type=jnp.float32)
    out = jnp.maximum(acc2, 0.0).astype(o_ref.dtype)

    # Valid rows of slab g live at conv2 rows [g*R, g*R+TH); store them densely.
    for g in range(G):
        o_ref[g * TH:(g + 1) * TH, :] = out[g * R:g * R + TH, :]


def _banded_weights(w, scale, n_in_cols, n_out_cols, col_offset, k_pad, dtype):
    """Fold BN scale into a (3,3,Ci,Co) HWIO conv weight and bake the three kw
    taps (plus implicit zero column padding) into banded matrices:
      band[kh, m*Ci+ci, c*Co+co] = (w*scale)[kh, kw, ci, co],
      kw = m - c + col_offset if 0 <= kw <= 2 else 0.
    The K axis is zero-padded up to k_pad so the MXU contraction is unmasked."""
    _, _, ci, co = w.shape
    ws = (w * scale).astype(jnp.float32)
    m = jnp.arange(n_in_cols)
    c = jnp.arange(n_out_cols)
    kw = jnp.arange(3)
    sel = (m[None, :, None] == c[None, None, :] + kw[:, None, None] - col_offset)
    band = jnp.einsum('kmc,hkio->hmico', sel.astype(jnp.float32), ws)
    band = band.reshape(3, n_in_cols * ci, n_out_cols * co)
    if k_pad > n_in_cols * ci:
        band = jnp.pad(band, ((0, 0), (0, k_pad - n_in_cols * ci), (0, 0)))
    return band.astype(dtype)


def _choose_tiling(N, H, W, Cin, Cout, isz, vmem_cap, m_target):
    """Pick strip height TH, number of strips S, slabs-per-block G."""
    lanes = W * Cout
    lanes_p = _round_up(lanes, 128)
    k1 = (W + 2) * Cin
    k1p = _round_up(k1, 128)

    def slab_cost(th):          # conservative per-slab VMEM bytes
        r = th + 4
        return (r * (5 * k1p * isz + 4 * lanes_p * 4 + 128 * 4)
                + th * 2 * lanes_p * 4)

    weight_cost = (2 * 3 * k1p * lanes_p * isz + 2 * 3 * lanes_p * lanes_p * isz
                   + 4 * 8 * lanes_p * 4)
    budget = int(0.5 * vmem_cap)

    # Whole image per slab whenever it fits (no halo duplication at all);
    # otherwise fall back to TH-row strips (multiple of 8), padding H up.
    if weight_cost + slab_cost(H) <= budget or H <= 8:
        TH, S = H, 1
    else:
        TH = 8
        for cand in range((H // 8) * 8, 7, -8):
            if weight_cost + slab_cost(cand) <= budget:
                TH = cand
                break
        S = -(-H // TH)
    Hp = S * TH

    # Fold G slabs into one block so the matmul M = G*(TH+4)-2 reaches m_target.
    NS = N * S
    g_fit = max(1, (budget - weight_cost) // max(1, slab_cost(TH)))
    divisors = [d for d in range(1, NS + 1) if NS % d == 0 and d <= g_fit] or [1]
    reach = [d for d in divisors if d * (TH + 4) - 2 >= m_target]
    G = min(reach) if reach else max(divisors)
    # v7x megacore: prefer >=2 parallel grid steps, but only if each step still
    # keeps a reasonably large matmul M (otherwise prioritise MXU row fill).
    if NS // G == 1 and NS >= 2:
        smaller = [d for d in divisors if NS // d >= 2]
        if smaller and max(smaller) * (TH + 4) - 2 >= max(128, m_target // 2):
            G = max(smaller)
    return TH, S, Hp, G, k1, k1p, lanes, lanes_p


def double_conv(x_nchw, w1, s1, b1, w2, s2, b2, *, compute_dtype=jnp.bfloat16,
                m_target=256):
    """Fused DoubleConv forward (eval-mode BN folded into scale/bias).

    x_nchw : (N, Cin, H, W) float32 (PyTorch NCHW).
    w1     : (3, 3, Cin, Cout) HWIO conv1 weight.
    s1, b1 : (Cout,) folded BN1 scale / bias (conv1 bias folded into b1).
    w2     : (3, 3, Cout, Cout) HWIO conv2 weight.
    s2, b2 : (Cout,) folded BN2 scale / bias.
    Returns (N, Cout, H, W) float32.
    """
    N, Cin, H, W = x_nchw.shape
    Cout = w1.shape[-1]
    isz = jnp.dtype(compute_dtype).itemsize

    try:                                    # per-generation VMEM budget
        vmem_cap = int(pltpu.get_tpu_info().vmem_capacity_bytes)
    except Exception:
        vmem_cap = 64 * 1024 * 1024         # conservative (v7x-sized) default

    TH, S, Hp, G, k1, k1p, lanes, lanes_p = _choose_tiling(
        N, H, W, Cin, Cout, isz, vmem_cap, m_target)
    R = TH + 4
    NS = N * S
    num_groups = NS // G

    # ---- constant folding (wrapper side): BN scale -> weights, kw taps + zero
    # COLUMN padding -> banded matrices, bias tiled onto the lane axis.
    w1b = _banded_weights(w1, s1, W + 2, W, 0, k1p, compute_dtype)   # (3, k1p, lanes)
    w2b = _banded_weights(w2, s2, W, W, 1, lanes, compute_dtype)     # (3, lanes, lanes)
    b1t = jnp.tile(b1.astype(jnp.float32), W).reshape(1, lanes)
    b2t = jnp.tile(b2.astype(jnp.float32), W).reshape(1, lanes)

    # ---- layout glue: NCHW -> NHWC, rows padded by 2 (+Hp-H tail), cols by 1,
    # (col, channel) flattened onto lanes and zero-padded to a 128 multiple.
    x_nhwc = jnp.transpose(x_nchw, (0, 2, 3, 1))
    x_pad = jnp.pad(x_nhwc, ((0, 0), (2, 2 + Hp - H), (1, 1), (0, 0)))
    x_flat = x_pad.reshape(N, Hp + 4, k1)
    if k1p > k1:
        x_flat = jnp.pad(x_flat, ((0, 0), (0, 0), (0, k1p - k1)))
    x_flat = x_flat.astype(compute_dtype)

    if S == 1:
        x_slabs = x_flat                       # (N, H+4, k1p): no halo copies at all
    else:
        # TODO(synk): for very tall images this re-materializes the 4 halo rows
        # per strip; a manual double-buffered DMA window (memory_space=pl.ANY)
        # would remove the extra ~4/TH input traffic.
        x_slabs = jnp.concatenate(
            [x_flat[:, s * TH:s * TH + R, :][:, None] for s in range(S)], axis=1
        ).reshape(NS, R, k1p)
    x_groups = x_slabs.reshape(num_groups, G * R, k1p)

    # Mask implementing conv2's zero ROW padding (rows outside [0, H)) and
    # zeroing the slab-straddling junk rows; depends only on the strip index.
    l = jnp.arange(R)
    s_idx = jnp.arange(S)
    r_img = s_idx[:, None] * TH + l[None, :] - 1
    valid = (l[None, :] <= TH + 1) & (r_img >= 0) & (r_img < H)
    mask = jnp.broadcast_to(valid[None].astype(jnp.float32), (N, S, R))
    mask = mask.reshape(num_groups, G * R, 1)

    # ---- honest VMEM estimate (lane/sublane padding + buffer counts).
    def vmem_estimate(const_bufs):
        rows = _round_up(G * R, 8)
        orows = _round_up(G * TH, 8)
        return (2 * rows * k1p * isz                   # double-buffered x blocks
                + 2 * rows * 128 * 4                   # double-buffered mask blocks
                + const_bufs * 3 * k1p * lanes_p * isz
                + const_bufs * 3 * lanes_p * lanes_p * isz
                + const_bufs * 2 * 8 * lanes_p * 4
                + 2 * orows * lanes_p * 4              # double-buffered output blocks
                + 3 * rows * k1p * isz                 # kh-shifted x copies
                + 3 * rows * lanes_p * 4)              # acc1 / y1 / acc2

    kernel = functools.partial(_double_conv_kernel, G=G, TH=TH)

    def run(single_buffer_consts):
        const_bufs = 1 if single_buffer_consts else 2
        est = vmem_estimate(const_bufs)
        vmem_limit = max(2 * est, 32 * 1024 * 1024)
        vmem_limit = int(min(vmem_limit, vmem_cap - 8 * 1024 * 1024))
        vmem_limit = int(max(vmem_limit,
                             min(est + (2 << 20), vmem_cap - 4 * 1024 * 1024)))
        if single_buffer_consts:
            def const_spec(shape, imap):
                return pl.BlockSpec(shape, imap, pipeline_mode=pl.Buffered(1))
        else:
            const_spec = pl.BlockSpec
        grid_spec = pltpu.PrefetchScalarGridSpec(
            num_scalar_prefetch=0,
            grid=(num_groups,),
            in_specs=[
                pl.BlockSpec((None, G * R, k1p), lambda i: (i, 0, 0)),
                pl.BlockSpec((None, G * R, 1), lambda i: (i, 0, 0)),
                const_spec((3, k1p, lanes), lambda i: (0, 0, 0)),
                const_spec((1, lanes), lambda i: (0, 0)),
                const_spec((3, lanes, lanes), lambda i: (0, 0, 0)),
                const_spec((1, lanes), lambda i: (0, 0)),
            ],
            out_specs=pl.BlockSpec((None, G * TH, lanes), lambda i: (i, 0, 0)),
        )
        return pl.pallas_call(
            kernel,
            out_shape=jax.ShapeDtypeStruct((num_groups, G * TH, lanes), jnp.float32),
            grid_spec=grid_spec,
            compiler_params=pltpu.CompilerParams(
                dimension_semantics=("parallel",),
                vmem_limit_bytes=vmem_limit),
        )(x_groups, mask, w1b, b1t, w2b, b2t)

    try:
        out = jax.block_until_ready(run(True))
    except Exception:
        # Fallback if this Pallas build rejects pipeline_mode=pl.Buffered(1).
        out = run(False)

    out = out.reshape(N, Hp, W, Cout)[:, :H]
    return jnp.transpose(out, (0, 3, 1, 2))


def _reference(x_nchw, w1, cb1, g1, be1, mu1, v1, w2, cb2, g2, be2, mu2, v2, eps):
    """Pure-JAX reference: Conv(+bias) -> eval-mode BN -> ReLU, twice."""
    x = jnp.transpose(x_nchw, (0, 2, 3, 1))
    dn = ('NHWC', 'HWIO', 'NHWC')
    y = lax.conv_general_dilated(x, w1, (1, 1), [(1, 1), (1, 1)],
                                 dimension_numbers=dn) + cb1
    y = jnp.maximum((y - mu1) * (g1 / jnp.sqrt(v1 + eps)) + be1, 0.0)
    y = lax.conv_general_dilated(y, w2, (1, 1), [(1, 1), (1, 1)],
                                 dimension_numbers=dn) + cb2
    y = jnp.maximum((y - mu2) * (g2 / jnp.sqrt(v2 + eps)) + be2, 0.0)
    return jnp.transpose(y, (0, 3, 1, 2))


if __name__ == "__main__":
    N, Cin, Cout, H, W = 2, 4, 8, 16, 16
    eps = 1e-5

    key = jax.random.PRNGKey(0)
    k = jax.random.split(key, 13)

    x = jax.random.normal(k[0], (N, Cin, H, W), jnp.float32)

    # Conv weights (HWIO for NHWC math) and biases.
    w1 = jax.random.normal(k[1], (3, 3, Cin, Cout), jnp.float32) * 0.1
    cb1 = jax.random.normal(k[2], (Cout,), jnp.float32) * 0.1
    w2 = jax.random.normal(k[3], (3, 3, Cout, Cout), jnp.float32) * 0.1
    cb2 = jax.random.normal(k[4], (Cout,), jnp.float32) * 0.1

    # BatchNorm parameters (eval mode, running stats).
    gamma1 = jax.random.uniform(k[5], (Cout,), jnp.float32, 0.5, 1.5)
    beta1 = jax.random.normal(k[6], (Cout,), jnp.float32) * 0.1
    mean1 = jax.random.normal(k[7], (Cout,), jnp.float32) * 0.1
    var1 = jax.random.uniform(k[8], (Cout,), jnp.float32, 0.5, 1.5)
    gamma2 = jax.random.uniform(k[9], (Cout,), jnp.float32, 0.5, 1.5)
    beta2 = jax.random.normal(k[10], (Cout,), jnp.float32) * 0.1
    mean2 = jax.random.normal(k[11], (Cout,), jnp.float32) * 0.1
    var2 = jax.random.uniform(k[12], (Cout,), jnp.float32, 0.5, 1.5)

    # Fold conv bias + eval-mode BN into per-channel scale/bias:
    #   y = (conv(x) + cb - mean) * gamma/sqrt(var+eps) + beta = conv(x)*s + b
    s1 = gamma1 / jnp.sqrt(var1 + eps)
    b1 = beta1 + (cb1 - mean1) * s1
    s2 = gamma2 / jnp.sqrt(var2 + eps)
    b2 = beta2 + (cb2 - mean2) * s2
    # TODO(synk): training-mode BatchNorm (batch statistics + running-stat
    # updates) is not expressed here; eval-mode folded BN only.

    ref = _reference(x, w1, cb1, gamma1, beta1, mean1, var1,
                     w2, cb2, gamma2, beta2, mean2, var2, eps)

    # Strict check of the f32 compute path.
    out_f32 = jax.block_until_ready(
        double_conv(x, w1, s1, b1, w2, s2, b2, compute_dtype=jnp.float32))
    assert out_f32.shape == (N, Cout, H, W)
    assert jnp.allclose(out_f32, ref, atol=1e-4, rtol=1e-4), "f32 mismatch vs reference"

    # Default (bf16 compute, f32 accumulation) path: loose sanity tolerance.
    out_bf16 = jax.block_until_ready(double_conv(x, w1, s1, b1, w2, s2, b2))
    assert out_bf16.shape == (N, Cout, H, W)
    assert jnp.allclose(out_bf16, ref, atol=1.5e-1, rtol=5e-2), "bf16 sanity check failed"

    print("KERNEL_OK")
</pallas_src>

<mosaic_0001>
module attributes {stable_mosaic.version = 11 : i64} {
  func.func @_double_conv_kernel(%arg0: i32, %arg1: memref<1x40x128xf32, #tpu.memory_space<vmem>>, %arg2: memref<1x40x1xf32, #tpu.memory_space<vmem>>, %arg3: memref<3x128x128xf32, #tpu.memory_space<vmem>>, %arg4: memref<1x128xf32, #tpu.memory_space<vmem>>, %arg5: memref<3x128x128xf32, #tpu.memory_space<vmem>>, %arg6: memref<1x128xf32, #tpu.memory_space<vmem>>, %arg7: memref<1x32x128xf32, #tpu.memory_space<vmem>>) attributes {dimension_semantics = [#tpu.dimension_semantics<parallel>], iteration_bounds = array<i64: 1>, scalar_prefetch = 0 : i64, scratch_operands = 0 : i64, tpu.core_type = #tpu.core_type<tc>, window_params = [{transform_indices = @transform_0, window_bounds = array<i64: 1, 40, 128>}, {transform_indices = @transform_1, window_bounds = array<i64: 1, 40, 1>}, {pipeline_mode = #tpu.pipeline_mode<synchronous>, transform_indices = @transform_2, window_bounds = array<i64: 3, 128, 128>}, {pipeline_mode = #tpu.pipeline_mode<synchronous>, transform_indices = @transform_3, window_bounds = array<i64: 1, 128>}, {pipeline_mode = #tpu.pipeline_mode<synchronous>, transform_indices = @transform_4, window_bounds = array<i64: 3, 128, 128>}, {pipeline_mode = #tpu.pipeline_mode<synchronous>, transform_indices = @transform_5, window_bounds = array<i64: 1, 128>}, {transform_indices = @transform_6, window_bounds = array<i64: 1, 32, 128>}]} {
    %c0 = arith.constant 0 : index
    %c0_0 = arith.constant 0 : index
    %c0_1 = arith.constant 0 : index
    %0 = vector.load %arg1[%c0, %c0_0, %c0_1] : memref<1x40x128xf32, #tpu.memory_space<vmem>>, vector<1x40x128xf32>
    %1 = vector.shape_cast %0 : vector<1x40x128xf32> to vector<40x128xf32>
    %2 = vector.extract_strided_slice %1 {offsets = [0, 0], sizes = [38, 128], strides = [1, 1]} : vector<40x128xf32> to vector<38x128xf32>
    %c0_2 = arith.constant 0 : index
    %c0_3 = arith.constant 0 : index
    %c0_4 = arith.constant 0 : index
    %3 = vector.load %arg3[%c0_2, %c0_3, %c0_4] : memref<3x128x128xf32, #tpu.memory_space<vmem>>, vector<1x128x128xf32>
    %4 = vector.shape_cast %3 : vector<1x128x128xf32> to vector<128x128xf32>
    %cst = arith.constant dense<0.000000e+00> : vector<38x128xf32>
    %5 = tpu.matmul %2, %4, %cst {dimension_numbers = #tpu.dot_dimension_numbers<[1], [0], [0], [1], [0, 0, 1, 1], [], []>} : vector<38x128xf32>, vector<128x128xf32>, vector<38x128xf32> -> vector<38x128xf32>
    %c0_5 = arith.constant 0 : index
    %c0_6 = arith.constant 0 : index
    %6 = vector.load %arg4[%c0_5, %c0_6] : memref<1x128xf32, #tpu.memory_space<vmem>>, vector<1x128xf32>
    %7 = vector.broadcast %6 : vector<1x128xf32> to vector<38x128xf32>
    %8 = arith.addf %5, %7 : vector<38x128xf32>
    %9 = vector.extract_strided_slice %1 {offsets = [1, 0], sizes = [38, 128], strides = [1, 1]} : vector<40x128xf32> to vector<38x128xf32>
    %c1 = arith.constant 1 : index
    %c0_7 = arith.constant 0 : index
    %c0_8 = arith.constant 0 : index
    %10 = vector.load %arg3[%c1, %c0_7, %c0_8] : memref<3x128x128xf32, #tpu.memory_space<vmem>>, vector<1x128x128xf32>
    %11 = vector.shape_cast %10 : vector<1x128x128xf32> to vector<128x128xf32>
    %cst_9 = arith.constant dense<0.000000e+00> : vector<38x128xf32>
    %12 = tpu.matmul %9, %11, %cst_9 {dimension_numbers = #tpu.dot_dimension_numbers<[1], [0], [0], [1], [0, 0, 1, 1], [], []>} : vector<38x128xf32>, vector<128x128xf32>, vector<38x128xf32> -> vector<38x128xf32>
    %13 = arith.addf %8, %12 : vector<38x128xf32>
    %14 = vector.extract_strided_slice %1 {offsets = [2, 0], sizes = [38, 128], strides = [1, 1]} : vector<40x128xf32> to vector<38x128xf32>
    %c2 = arith.constant 2 : index
    %c0_10 = arith.constant 0 : index
    %c0_11 = arith.constant 0 : index
    %15 = vector.load %arg3[%c2, %c0_10, %c0_11] : memref<3x128x128xf32, #tpu.memory_space<vmem>>, vector<1x128x128xf32>
    %16 = vector.shape_cast %15 : vector<1x128x128xf32> to vector<128x128xf32>
    %cst_12 = arith.constant dense<0.000000e+00> : vector<38x128xf32>
    %17 = tpu.matmul %14, %16, %cst_12 {dimension_numbers = #tpu.dot_dimension_numbers<[1], [0], [0], [1], [0, 0, 1, 1], [], []>} : vector<38x128xf32>, vector<128x128xf32>, vector<38x128xf32> -> vector<38x128xf32>
    %18 = arith.addf %13, %17 : vector<38x128xf32>
    %cst_13 = arith.constant 0.000000e+00 : f32
    %19 = vector.broadcast %cst_13 : f32 to vector<38x128xf32>
    %20 = arith.maximumf %18, %19 : vector<38x128xf32>
    %c0_14 = arith.constant 0 : index
    %c0_15 = arith.constant 0 : index
    %c0_16 = arith.constant 0 : index
    %21 = vector.load %arg2[%c0_14, %c0_15, %c0_16] : memref<1x40x1xf32, #tpu.memory_space<vmem>>, vector<1x38x1xf32>
    %22 = vector.shape_cast %21 : vector<1x38x1xf32> to vector<38x1xf32>
    %23 = vector.broadcast %22 : vector<38x1xf32> to vector<38x128xf32>
    %24 = arith.mulf %20, %23 : vector<38x128xf32>
    %25 = vector.extract_strided_slice %24 {offsets = [0, 0], sizes = [36, 128], strides = [1, 1]} : vector<38x128xf32> to vector<36x128xf32>
    %c0_17 = arith.constant 0 : index
    %c0_18 = arith.constant 0 : index
    %c0_19 = arith.constant 0 : index
    %26 = vector.load %arg5[%c0_17, %c0_18, %c0_19] : memref<3x128x128xf32, #tpu.memory_space<vmem>>, vector<1x128x128xf32>
    %27 = vector.shape_cast %26 : vector<1x128x128xf32> to vector<128x128xf32>
    %cst_20 = arith.constant dense<0.000000e+00> : vector<36x128xf32>
    %28 = tpu.matmul %25, %27, %cst_20 {dimension_numbers = #tpu.dot_dimension_numbers<[1], [0], [0], [1], [0, 0, 1, 1], [], []>} : vector<36x128xf32>, vector<128x128xf32>, vector<36x128xf32> -> vector<36x128xf32>
    %c0_21 = arith.constant 0 : index
    %c0_22 = arith.constant 0 : index
    %29 = vector.load %arg6[%c0_21, %c0_22] : memref<1x128xf32, #tpu.memory_space<vmem>>, vector<1x128xf32>
    %30 = vector.broadcast %29 : vector<1x128xf32> to vector<36x128xf32>
    %31 = arith.addf %28, %30 : vector<36x128xf32>
    %32 = vector.extract_strided_slice %24 {offsets = [1, 0], sizes = [36, 128], strides = [1, 1]} : vector<38x128xf32> to vector<36x128xf32>
    %c1_23 = arith.constant 1 : index
    %c0_24 = arith.constant 0 : index
    %c0_25 = arith.constant 0 : index
    %33 = vector.load %arg5[%c1_23, %c0_24, %c0_25] : memref<3x128x128xf32, #tpu.memory_space<vmem>>, vector<1x128x128xf32>
    %34 = vector.shape_cast %33 : vector<1x128x128xf32> to vector<128x128xf32>
    %cst_26 = arith.constant dense<0.000000e+00> : vector<36x128xf32>
    %35 = tpu.matmul %32, %34, %cst_26 {dimension_numbers = #tpu.dot_dimension_numbers<[1], [0], [0], [1], [0, 0, 1, 1], [], []>} : vector<36x128xf32>, vector<128x128xf32>, vector<36x128xf32> -> vector<36x128xf32>
    %36 = arith.addf %31, %35 : vector<36x128xf32>
    %37 = vector.extract_strided_slice %24 {offsets = [2, 0], sizes = [36, 128], strides = [1, 1]} : vector<38x128xf32> to vector<36x128xf32>
    %c2_27 = arith.constant 2 : index
    %c0_28 = arith.constant 0 : index
    %c0_29 = arith.constant 0 : index
    %38 = vector.load %arg5[%c2_27, %c0_28, %c0_29] : memref<3x128x128xf32, #tpu.memory_space<vmem>>, vector<1x128x128xf32>
    %39 = vector.shape_cast %38 : vector<1x128x128xf32> to vector<128x128xf32>
    %cst_30 = arith.constant dense<0.000000e+00> : vector<36x128xf32>
    %40 = tpu.matmul %37, %39, %cst_30 {dimension_numbers = #tpu.dot_dimension_numbers<[1], [0], [0], [1], [0, 0, 1, 1], [], []>} : vector<36x128xf32>, vector<128x128xf32>, vector<36x128xf32> -> vector<36x128xf32>
    %41 = arith.addf %36, %40 : vector<36x128xf32>
    %cst_31 = arith.constant 0.000000e+00 : f32
    %42 = vector.broadcast %cst_31 : f32 to vector<36x128xf32>
    %43 = arith.maximumf %41, %42 : vector<36x128xf32>
    %44 = vector.extract_strided_slice %43 {offsets = [0, 0], sizes = [16, 128], strides = [1, 1]} : vector<36x128xf32> to vector<16x128xf32>
    %c0_32 = arith.constant 0 : index
    %c0_33 = arith.constant 0 : index
    %c0_34 = arith.constant 0 : index
    %45 = vector.load %arg7[%c0_32, %c0_33, %c0_34] : memref<1x32x128xf32, #tpu.memory_space<vmem>>, vector<1x16x128xf32>
    %46 = vector.shape_cast %45 : vector<1x16x128xf32> to vector<16x128xf32>
    %47 = vector.shape_cast %44 : vector<16x128xf32> to vector<1x16x128xf32>
    tpu.vector_store %arg7[%c0_32, %c0_33, %c0_34], %47 {strides = array<i32>} : memref<1x32x128xf32, #tpu.memory_space<vmem>>, vector<1x16x128xf32>,
    %48 = vector.extract_strided_slice %43 {offsets = [20, 0], sizes = [16, 128], strides = [1, 1]} : vector<36x128xf32> to vector<16x128xf32>
    %c0_35 = arith.constant 0 : index
    %c16 = arith.constant 16 : index
    %c0_36 = arith.constant 0 : index
    %49 = vector.load %arg7[%c0_35, %c16, %c0_36] : memref<1x32x128xf32, #tpu.memory_space<vmem>>, vector<1x16x128xf32>
    %50 = vector.shape_cast %49 : vector<1x16x128xf32> to vector<16x128xf32>
    %51 = vector.shape_cast %48 : vector<16x128xf32> to vector<1x16x128xf32>
    tpu.vector_store %arg7[%c0_35, %c16, %c0_36], %51 {strides = array<i32>} : memref<1x32x128xf32, #tpu.memory_space<vmem>>, vector<1x16x128xf32>,
    return
  }
  func.func @transform_0(%arg0: i32) -> (i32, i32, i32) {
    %c0_i32 = arith.constant 0 : i32
    %c0_i32_0 = arith.constant 0 : i32
    %c0_i32_1 = arith.constant 0 : i32
    return %arg0, %c0_i32, %c0_i32_0 : i32, i32, i32
  }
  func.func @transform_1(%arg0: i32) -> (i32, i32, i32) {
    %c0_i32 = arith.constant 0 : i32
    %c0_i32_0 = arith.constant 0 : i32
    %c0_i32_1 = arith.constant 0 : i32
    return %arg0, %c0_i32, %c0_i32_0 : i32, i32, i32
  }
  func.func @transform_2(%arg0: i32) -> (i32, i32, i32) {
    %c0_i32 = arith.constant 0 : i32
    %c0_i32_0 = arith.constant 0 : i32
    %c0_i32_1 = arith.constant 0 : i32
    %c0_i32_2 = arith.constant 0 : i32
    return %c0_i32, %c0_i32_0, %c0_i32_1 : i32, i32, i32
  }
  func.func @transform_3(%arg0: i32) -> (i32, i32) {
    %c0_i32 = arith.constant 0 : i32
    %c0_i32_0 = arith.constant 0 : i32
    %c0_i32_1 = arith.constant 0 : i32
    return %c0_i32, %c0_i32_0 : i32, i32
  }
  func.func @transform_4(%arg0: i32) -> (i32, i32, i32) {
    %c0_i32 = arith.constant 0 : i32
    %c0_i32_0 = arith.constant 0 : i32
    %c0_i32_1 = arith.constant 0 : i32
    %c0_i32_2 = arith.constant 0 : i32
    return %c0_i32, %c0_i32_0, %c0_i32_1 : i32, i32, i32
  }
  func.func @transform_5(%arg0: i32) -> (i32, i32) {
    %c0_i32 = arith.constant 0 : i32
    %c0_i32_0 = arith.constant 0 : i32
    %c0_i32_1 = arith.constant 0 : i32
    return %c0_i32, %c0_i32_0 : i32, i32
  }
  func.func @transform_6(%arg0: i32) -> (i32, i32, i32) {
    %c0_i32 = arith.constant 0 : i32
    %c0_i32_0 = arith.constant 0 : i32
    %c0_i32_1 = arith.constant 0 : i32
    return %arg0, %c0_i32, %c0_i32_0 : i32, i32, i32
  }
}

module attributes {stable_mosaic.version = 11 : i64} {
  func.func @_double_conv_kernel(%arg0: i32, %arg1: memref<1x40x128xf32, #tpu.memory_space<vmem>>, %arg2: memref<1x40x1xf32, #tpu.memory_space<vmem>>, %arg3: memref<3x128x128xf32, #tpu.memory_space<vmem>>, %arg4: memref<1x128xf32, #tpu.memory_space<vmem>>, %arg5: memref<3x128x128xf32, #tpu.memory_space<vmem>>, %arg6: memref<1x128xf32, #tpu.memory_space<vmem>>, %arg7: memref<1x32x128xf32, #tpu.memory_space<vmem>>) attributes {dimension_semantics = [#tpu.dimension_semantics<parallel>], iteration_bounds = array<i64: 1>, scalar_prefetch = 0 : i64, scratch_operands = 0 : i64, tpu.core_type = #tpu.core_type<tc>, window_params = [{transform_indices = @transform_0, window_bounds = array<i64: 1, 40, 128>}, {transform_indices = @transform_1, window_bounds = array<i64: 1, 40, 1>}, {pipeline_mode = #tpu.pipeline_mode<synchronous>, transform_indices = @transform_2, window_bounds = array<i64: 3, 128, 128>}, {pipeline_mode = #tpu.pipeline_mode<synchronous>, transform_indices = @transform_3, window_bounds = array<i64: 1, 128>}, {pipeline_mode = #tpu.pipeline_mode<synchronous>, transform_indices = @transform_4, window_bounds = array<i64: 3, 128, 128>}, {pipeline_mode = #tpu.pipeline_mode<synchronous>, transform_indices = @transform_5, window_bounds = array<i64: 1, 128>}, {transform_indices = @transform_6, window_bounds = array<i64: 1, 32, 128>}]} {
    %c0 = arith.constant 0 : index
    %c0_0 = arith.constant 0 : index
    %c0_1 = arith.constant 0 : index
    %0 = vector.load %arg1[%c0, %c0_0, %c0_1] : memref<1x40x128xf32, #tpu.memory_space<vmem>>, vector<1x40x128xf32>
    %1 = vector.shape_cast %0 : vector<1x40x128xf32> to vector<40x128xf32>
    %2 = vector.extract_strided_slice %1 {offsets = [0, 0], sizes = [38, 128], strides = [1, 1]} : vector<40x128xf32> to vector<38x128xf32>
    %c0_2 = arith.constant 0 : index
    %c0_3 = arith.constant 0 : index
    %c0_4 = arith.constant 0 : index
    %3 = vector.load %arg3[%c0_2, %c0_3, %c0_4] : memref<3x128x128xf32, #tpu.memory_space<vmem>>, vector<1x128x128xf32>
    %4 = vector.shape_cast %3 : vector<1x128x128xf32> to vector<128x128xf32>
    %cst = arith.constant dense<0.000000e+00> : vector<38x128xf32>
    %5 = tpu.matmul %2, %4, %cst {dimension_numbers = #tpu.dot_dimension_numbers<[1], [0], [0], [1], [0, 0, 1, 1], [], []>} : vector<38x128xf32>, vector<128x128xf32>, vector<38x128xf32> -> vector<38x128xf32>
    %c0_5 = arith.constant 0 : index
    %c0_6 = arith.constant 0 : index
    %6 = vector.load %arg4[%c0_5, %c0_6] : memref<1x128xf32, #tpu.memory_space<vmem>>, vector<1x128xf32>
    %7 = vector.broadcast %6 : vector<1x128xf32> to vector<38x128xf32>
    %8 = arith.addf %5, %7 : vector<38x128xf32>
    %9 = vector.extract_strided_slice %1 {offsets = [1, 0], sizes = [38, 128], strides = [1, 1]} : vector<40x128xf32> to vector<38x128xf32>
    %c1 = arith.constant 1 : index
    %c0_7 = arith.constant 0 : index
    %c0_8 = arith.constant 0 : index
    %10 = vector.load %arg3[%c1, %c0_7, %c0_8] : memref<3x128x128xf32, #tpu.memory_space<vmem>>, vector<1x128x128xf32>
    %11 = vector.shape_cast %10 : vector<1x128x128xf32> to vector<128x128xf32>
    %cst_9 = arith.constant dense<0.000000e+00> : vector<38x128xf32>
    %12 = tpu.matmul %9, %11, %cst_9 {dimension_numbers = #tpu.dot_dimension_numbers<[1], [0], [0], [1], [0, 0, 1, 1], [], []>} : vector<38x128xf32>, vector<128x128xf32>, vector<38x128xf32> -> vector<38x128xf32>
    %13 = arith.addf %8, %12 : vector<38x128xf32>
    %14 = vector.extract_strided_slice %1 {offsets = [2, 0], sizes = [38, 128], strides = [1, 1]} : vector<40x128xf32> to vector<38x128xf32>
    %c2 = arith.constant 2 : index
    %c0_10 = arith.constant 0 : index
    %c0_11 = arith.constant 0 : index
    %15 = vector.load %arg3[%c2, %c0_10, %c0_11] : memref<3x128x128xf32, #tpu.memory_space<vmem>>, vector<1x128x128xf32>
    %16 = vector.shape_cast %15 : vector<1x128x128xf32> to vector<128x128xf32>
    %cst_12 = arith.constant dense<0.000000e+00> : vector<38x128xf32>
    %17 = tpu.matmul %14, %16, %cst_12 {dimension_numbers = #tpu.dot_dimension_numbers<[1], [0], [0], [1], [0, 0, 1, 1], [], []>} : vector<38x128xf32>, vector<128x128xf32>, vector<38x128xf32> -> vector<38x128xf32>
    %18 = arith.addf %13, %17 : vector<38x128xf32>
    %cst_13 = arith.constant 0.000000e+00 : f32
    %19 = vector.broadcast %cst_13 : f32 to vector<38x128xf32>
    %20 = arith.maximumf %18, %19 : vector<38x128xf32>
    %c0_14 = arith.constant 0 : index
    %c0_15 = arith.constant 0 : index
    %c0_16 = arith.constant 0 : index
    %21 = vector.load %arg2[%c0_14, %c0_15, %c0_16] : memref<1x40x1xf32, #tpu.memory_space<vmem>>, vector<1x38x1xf32>
    %22 = vector.shape_cast %21 : vector<1x38x1xf32> to vector<38x1xf32>
    %23 = vector.broadcast %22 : vector<38x1xf32> to vector<38x128xf32>
    %24 = arith.mulf %20, %23 : vector<38x128xf32>
    %25 = vector.extract_strided_slice %24 {offsets = [0, 0], sizes = [36, 128], strides = [1, 1]} : vector<38x128xf32> to vector<36x128xf32>
    %c0_17 = arith.constant 0 : index
    %c0_18 = arith.constant 0 : index
    %c0_19 = arith.constant 0 : index
    %26 = vector.load %arg5[%c0_17, %c0_18, %c0_19] : memref<3x128x128xf32, #tpu.memory_space<vmem>>, vector<1x128x128xf32>
    %27 = vector.shape_cast %26 : vector<1x128x128xf32> to vector<128x128xf32>
    %cst_20 = arith.constant dense<0.000000e+00> : vector<36x128xf32>
    %28 = tpu.matmul %25, %27, %cst_20 {dimension_numbers = #tpu.dot_dimension_numbers<[1], [0], [0], [1], [0, 0, 1, 1], [], []>} : vector<36x128xf32>, vector<128x128xf32>, vector<36x128xf32> -> vector<36x128xf32>
    %c0_21 = arith.constant 0 : index
    %c0_22 = arith.constant 0 : index
    %29 = vector.load %arg6[%c0_21, %c0_22] : memref<1x128xf32, #tpu.memory_space<vmem>>, vector<1x128xf32>
    %30 = vector.broadcast %29 : vector<1x128xf32> to vector<36x128xf32>
    %31 = arith.addf %28, %30 : vector<36x128xf32>
    %32 = vector.extract_strided_slice %24 {offsets = [1, 0], sizes = [36, 128], strides = [1, 1]} : vector<38x128xf32> to vector<36x128xf32>
    %c1_23 = arith.constant 1 : index
    %c0_24 = arith.constant 0 : index
    %c0_25 = arith.constant 0 : index
    %33 = vector.load %arg5[%c1_23, %c0_24, %c0_25] : memref<3x128x128xf32, #tpu.memory_space<vmem>>, vector<1x128x128xf32>
    %34 = vector.shape_cast %33 : vector<1x128x128xf32> to vector<128x128xf32>
    %cst_26 = arith.constant dense<0.000000e+00> : vector<36x128xf32>
    %35 = tpu.matmul %32, %34, %cst_26 {dimension_numbers = #tpu.dot_dimension_numbers<[1], [0], [0], [1], [0, 0, 1, 1], [], []>} : vector<36x128xf32>, vector<128x128xf32>, vector<36x128xf32> -> vector<36x128xf32>
    %36 = arith.addf %31, %35 : vector<36x128xf32>
    %37 = vector.extract_strided_slice %24 {offsets = [2, 0], sizes = [36, 128], strides = [1, 1]} : vector<38x128xf32> to vector<36x128xf32>
    %c2_27 = arith.constant 2 : index
    %c0_28 = arith.constant 0 : index
    %c0_29 = arith.constant 0 : index
    %38 = vector.load %arg5[%c2_27, %c0_28, %c0_29] : memref<3x128x128xf32, #tpu.memory_space<vmem>>, vector<1x128x128xf32>
    %39 = vector.shape_cast %38 : vector<1x128x128xf32> to vector<128x128xf32>
    %cst_30 = arith.constant dense<0.000000e+00> : vector<36x128xf32>
    %40 = tpu.matmul %37, %39, %cst_30 {dimension_numbers = #tpu.dot_dimension_numbers<[1], [0], [0], [1], [0, 0, 1, 1], [], []>} : vector<36x128xf32>, vector<128x128xf32>, vector<36x128xf32> -> vector<36x128xf32>
    %41 = arith.addf %36, %40 : vector<36x128xf32>
    %cst_31 = arith.constant 0.000000e+00 : f32
    %42 = vector.broadcast %cst_31 : f32 to vector<36x128xf32>
    %43 = arith.maximumf %41, %42 : vector<36x128xf32>
    %44 = vector.extract_strided_slice %43 {offsets = [0, 0], sizes = [16, 128], strides = [1, 1]} : vector<36x128xf32> to vector<16x128xf32>
    %c0_32 = arith.constant 0 : index
    %c0_33 = arith.constant 0 : index
    %c0_34 = arith.constant 0 : index
    %45 = vector.load %arg7[%c0_32, %c0_33, %c0_34] : memref<1x32x128xf32, #tpu.memory_space<vmem>>, vector<1x16x128xf32>
    %46 = vector.shape_cast %45 : vector<1x16x128xf32> to vector<16x128xf32>
    %47 = vector.shape_cast %44 : vector<16x128xf32> to vector<1x16x128xf32>
    tpu.vector_store %arg7[%c0_32, %c0_33, %c0_34], %47 {strides = array<i32>} : memref<1x32x128xf32, #tpu.memory_space<vmem>>, vector<1x16x128xf32>,
    %48 = vector.extract_strided_slice %43 {offsets = [20, 0], sizes = [16, 128], strides = [1, 1]} : vector<36x128xf32> to vector<16x128xf32>
    %c0_35 = arith.constant 0 : index
    %c16 = arith.constant 16 : index
    %c0_36 = arith.constant 0 : index
    %49 = vector.load %arg7[%c0_35, %c16, %c0_36] : memref<1x32x128xf32, #tpu.memory_space<vmem>>, vector<1x16x128xf32>
    %50 = vector.shape_cast %49 : vector<1x16x128xf32> to vector<16x128xf32>
    %51 = vector.shape_cast %48 : vector<16x128xf32> to vector<1x16x128xf32>
    tpu.vector_store %arg7[%c0_35, %c16, %c0_36], %51 {strides = array<i32>} : memref<1x32x128xf32, #tpu.memory_space<vmem>>, vector<1x16x128xf32>,
    return
  }
  func.func @transform_0(%arg0: i32) -> (i32, i32, i32) {
    %c0_i32 = arith.constant 0 : i32
    %c0_i32_0 = arith.constant 0 : i32
    %c0_i32_1 = arith.constant 0 : i32
    return %arg0, %c0_i32, %c0_i32_0 : i32, i32, i32
  }
  func.func @transform_1(%arg0: i32) -> (i32, i32, i32) {
    %c0_i32 = arith.constant 0 : i32
    %c0_i32_0 = arith.constant 0 : i32
    %c0_i32_1 = arith.constant 0 : i32
    return %arg0, %c0_i32, %c0_i32_0 : i32, i32, i32
  }
  func.func @transform_2(%arg0: i32) -> (i32, i32, i32) {
    %c0_i32 = arith.constant 0 : i32
    %c0_i32_0 = arith.constant 0 : i32
    %c0_i32_1 = arith.constant 0 : i32
    %c0_i32_2 = arith.constant 0 : i32
    return %c0_i32, %c0_i32_0, %c0_i32_1 : i32, i32, i32
  }
  func.func @transform_3(%arg0: i32) -> (i32, i32) {
    %c0_i32 = arith.constant 0 : i32
    %c0_i32_0 = arith.constant 0 : i32
    %c0_i32_1 = arith.constant 0 : i32
    return %c0_i32, %c0_i32_0 : i32, i32
  }
  func.func @transform_4(%arg0: i32) -> (i32, i32, i32) {
    %c0_i32 = arith.constant 0 : i32
    %c0_i32_0 = arith.constant 0 : i32
    %c0_i32_1 = arith.constant 0 : i32
    %c0_i32_2 = arith.constant 0 : i32
    return %c0_i32, %c0_i32_0, %c0_i32_1 : i32, i32, i32
  }
  func.func @transform_5(%arg0: i32) -> (i32, i32) {
    %c0_i32 = arith.constant 0 : i32
    %c0_i32_0 = arith.constant 0 : i32
    %c0_i32_1 = arith.constant 0 : i32
    return %c0_i32, %c0_i32_0 : i32, i32
  }
  func.func @transform_6(%arg0: i32) -> (i32, i32, i32) {
    %c0_i32 = arith.constant 0 : i32
    %c0_i32_0 = arith.constant 0 : i32
    %c0_i32_1 = arith.constant 0 : i32
    return %arg0, %c0_i32, %c0_i32_0 : i32, i32, i32
  }
}

</mosaic_0001>

<bundles_post_ra>
// kernel: tpu_custom_call.1
= control target key start
LH: loop header
LB: loop body
LE: loop exit
PB: predicated region body
PF: predicated region fallthrough
CT: control target
= control target key end

     0   :  { %11 = vsyncpa [#allocation3], 0  ;;  %s1667_s0 = inlined_call_operand.vmem [shape: f32[1,40,128], index: 0, kind: input, shape index: {}]   ;;  %s1668_s1 = inlined_call_operand.vmem [shape: f32[1,40,1], index: 1, kind: input, shape index: {}]   ;;  %s1669_s2 = inlined_call_operand.hbm [shape: f32[3,128,128], index: 2, kind: input, shape index: {}]   ;;  %s1670_s3 = inlined_call_operand.vmem [shape: f32[1,128], index: 3, kind: input, shape index: {}]   ;;  %s1671_s4 = inlined_call_operand.hbm [shape: f32[3,128,128], index: 4, kind: input, shape index: {}]   ;;  %s1672_s5 = inlined_call_operand.vmem [shape: f32[1,128], index: 5, kind: input, shape index: {}]   ;;  %s1673_s6 = inlined_call_operand.hbm [shape: f32[1,32,128], index: 6, kind: output, shape index: {}]  }
   0x1   :  { %12 = vsyncpa [#allocation6], 0 }
   0x2   :  { %13 = vsyncpa [#allocation4], 0  ;;  %s1353_s21 = smov [#allocation2]  }
   0x3   :  { %s23_s22 = sshll.u32 %s1353_s21, 4  ;;  %s24_s22 = int_to_ptr.vmem [resolvable:$true] %s23_s22 }
   0x4   :  { %s1295_s23 = scalar_lea.vmem %s24_s22, 6144  ;;  %p1300_p1 = scmp.lt.s32.totalorder %s24_s22, %s24_s22 }
   0x5   :  { %p1296_p0 = scmp.ne.s32.totalorder %s24_s22, %s1295_s23  ;;  %p1301_p2 = scmp.lt.s32.totalorder %s1295_s23, %s1295_s23 }
   0x7   :  { %p1302_p3 = por %p1301_p2, %p1300_p1 }
   0x9   :  { %p1303_p4 = pnand %p1302_p3, %p1296_p0 }
   0xb   :  { %1306 = shalt.err (!%p1303_p4)
}
   0xc   :  { %s1354_s24 = smov 128   ;;  %s1355_s25 = smov 8  }
   0xd   :  { %29 = dma.hbm_to_vmem [thread:$0]  %s1669_s2, 6144, %s24_s22, [#allocation3], %s1354_s24, %s1354_s24, %s1355_s25  }
   0xe   :  { %s1356_s28 = smov [#allocation5]  }
   0xf   :  { %s37_s29 = sshll.u32 %s1356_s28, 4  ;;  %s38_s29 = int_to_ptr.vmem [resolvable:$true] %s37_s29 }
  0x10   :  { %s1315_s30 = scalar_lea.vmem %s38_s29, 6144  ;;  %p1320_p6 = scmp.lt.s32.totalorder %s38_s29, %s38_s29 }
  0x11   :  { %p1316_p5 = scmp.ne.s32.totalorder %s38_s29, %s1315_s30  ;;  %p1321_p7 = scmp.lt.s32.totalorder %s1315_s30, %s1315_s30 }
  0x13   :  { %p1322_p8 = por %p1321_p7, %p1320_p6 }
  0x15   :  { %p1323_p9 = pnand %p1322_p8, %p1316_p5 }
  0x17   :  { %1326 = shalt.err (!%p1323_p9)
}
  0x18   :  { %43 = dma.hbm_to_vmem [thread:$0]  %s1671_s4, 6144, %s38_s29, [#allocation6], %s1354_s24, %s1354_s24, %s1355_s25  }
  0x19   :  { %1347 = dma.done.wait [#allocation3], 6144  }
  0x1a   :  { %1348 = vsyncadd [#allocation3], 4294961152 }
  0x1b   :  { %1349 = dma.done.wait [#allocation6], 6144  }
  0x1c   :  { %1350 = vsyncadd [#allocation6], 4294961152  ;;  %v1357_v0 = vmov 0.0   ;;  %vm1358_vm0 = vmmov 0   ;;  %v1359_v1 = vmov 0   ;;  %v72_v2 = vld [vmem:[#allocation2 + $0x78] sm:$0xff] }
  0x1d   :  { %995 = vmatprep.subr.mxu0 %v1357_v0  ;;  %1042 = vmatprep.subr.mxu1 %v1357_v0  ;;  %v71_v3 = vld [vmem:[#allocation2 + $0x70] sm:$0xff]  ;;  %v186_v4 = vld [vmem:[#allocation2 + $0xf8] sm:$0xff]  ;;  %v70_v6 = vld [vmem:[#allocation2 + $0x68] sm:$0xff]  ;;  %vm192_vm1 = vcmask 1046528   ;;  %vm319_vm2 = vcmask 1045504  }
  0x1e   :  { %1027 = vmatprep.mubr.msk.f32.mxu0 %vm1358_vm0, %v1357_v0  ;;  %1074 = vmatprep.mubr.msk.f32.mxu1 %vm1358_vm0, %v1357_v0  ;;  %v185_v5 = vld [vmem:[#allocation2 + $0xf0] sm:$0xff]  ;;  %v184_v7 = vld [vmem:[#allocation2 + $0xe8] sm:$0xff]  ;;  %v69_v8 = vld [vmem:[#allocation2 + $0x60] sm:$0xff] }
  0x1f   :  { %1285 = vset.pattern.permute.xlu0 %v1359_v1  ;;  %1286 = vset.pattern.permute.xlu1 %v1359_v1  ;;  %v183_v9 = vld [vmem:[#allocation2 + $0xe0] sm:$0xff]  ;;  %v68_v10 = vld [vmem:[#allocation2 + $0x58] sm:$0xff]  ;;  %v67_v12 = vld [vmem:[#allocation2 + $0x50] sm:$0xff] }
  0x20   :  { %996 = vmatpush3.msra.mxu0 %v72_v2  ;;  %1043 = vmatpush3.msra.mxu1 %v186_v4  ;;  %v182_v11 = vld [vmem:[#allocation2 + $0xd8] sm:$0xff]  ;;  %v181_v13 = vld [vmem:[#allocation2 + $0xd0] sm:$0xff]  ;;  %v66_v14 = vld [vmem:[#allocation2 + $0x48] sm:$0xff] }
  0x21   :  { %997 = vmatprep.subr.mxu0 %v1357_v0  ;;  %1044 = vmatprep.subr.mxu1 %v1357_v0  ;;  %v180_v15 = vld [vmem:[#allocation2 + $0xc8] sm:$0xff]  ;;  %v65_v16 = vld [vmem:[#allocation2 + $0x40] sm:$0xff]  ;;  %v64_v18 = vld [vmem:[#allocation2 + $0x38] sm:$0xff] }
  0x22   :  { %998 = vmatpush3.msra.mxu0 %v71_v3  ;;  %1045 = vmatpush3.msra.mxu1 %v185_v5  ;;  %v179_v17 = vld [vmem:[#allocation2 + $0xc0] sm:$0xff]  ;;  %v178_v19 = vld [vmem:[#allocation2 + $0xb8] sm:$0xff]  ;;  %v63_v20 = vld [vmem:[#allocation2 + $0x30] sm:$0xff] }
  0x23   :  { %999 = vmatprep.subr.mxu0 %v1357_v0  ;;  %1046 = vmatprep.subr.mxu1 %v1357_v0  ;;  %v177_v21 = vld [vmem:[#allocation2 + $0xb0] sm:$0xff]  ;;  %v62_v22 = vld [vmem:[#allocation2 + $0x28] sm:$0xff]  ;;  %v61_v24 = vld [vmem:[#allocation2 + $0x20] sm:$0xff] }
  0x24   :  { %1000 = vmatpush3.msra.mxu0 %v70_v6  ;;  %1047 = vmatpush3.msra.mxu1 %v184_v7  ;;  %v176_v23 = vld [vmem:[#allocation2 + $0xa8] sm:$0xff]  ;;  %v175_v25 = vld [vmem:[#allocation2 + $0xa0] sm:$0xff]  ;;  %v60_v26 = vld [vmem:[#allocation2 + $0x18] sm:$0xff] }
  0x25   :  { %1001 = vmatprep.subr.mxu0 %v1357_v0  ;;  %1048 = vmatprep.subr.mxu1 %v1357_v0  ;;  %v174_v27 = vld [vmem:[#allocation2 + $0x98] sm:$0xff]  ;;  %v1439_v28 = vld [vmem:[%s1667_s0] sm:$0xff]  ;;  %v1444_v29 = vld [vmem:[%s1667_s0 + $0x8] sm:$0xff] }
  0x26   :  { %1002 = vmatpush3.msra.mxu0 %v69_v8  ;;  %1049 = vmatpush3.msra.mxu1 %v183_v9  ;;  %v59_v30 = vld [vmem:[#allocation2 + $0x10] sm:$0xff]  ;;  %v58_v32 = vld [vmem:[#allocation2 + $0x8] sm:$0xff]  ;;  %v193_v33 = vrot.slane %v1439_v28, 1  ;;  %v194_v35 = vrot.slane %v1444_v29, 1  ;;  %v57_v36 = vld [vmem:[#allocation2] sm:$0xff]  ;;  %v320_v4 = vrot.slane %v1439_v28, 2 }
  0x27   :  { %1003 = vmatprep.subr.mxu0 %v1357_v0  ;;  %1050 = vmatprep.subr.mxu1 %v1357_v0  ;;  %v173_v31 = vld [vmem:[#allocation2 + $0x90] sm:$0xff]  ;;  %v172_v34 = vld [vmem:[#allocation2 + $0x88] sm:$0xff]  ;;  %v171_v37 = vld [vmem:[#allocation2 + $0x80] sm:$0xff]  ;;  %v321_v5 = vrot.slane %v1444_v29, 2 }
  0x28   :  { %1004 = vmatpush3.msra.mxu0 %v68_v10  ;;  %1051 = vmatpush3.msra.mxu1 %v182_v11  ;;  %v1457_v38 = vld [vmem:[%s1667_s0 + $0x10] sm:$0xff]  ;;  %v318_v39 = vld [vmem:[#allocation2 + $0x178] sm:$0xff]  ;;  %v195_v40 = vsel %vm192_vm1, %v193_v33, %v194_v35  ;;  %v316_v44 = vld [vmem:[#allocation2 + $0x168] sm:$0xff] }
  0x29   :  { %1005 = vmatprep.subr.mxu0 %v1357_v0  ;;  %1052 = vmatprep.subr.mxu1 %v1357_v0  ;;  %v196_v41 = vrot.slane %v1457_v38, 1  ;;  %v317_v42 = vld [vmem:[#allocation2 + $0x170] sm:$0xff]  ;;  %v1468_v43 = vld [vmem:[%s1667_s0 + $0x18] sm:$0xff]  ;;  %v315_v47 = vld [vmem:[#allocation2 + $0x160] sm:$0xff]  ;;  %v323_v8 = vrot.slane %v1457_v38, 2  ;;  %v322_v9 = vsel %vm319_vm2, %v320_v4, %v321_v5 }
  0x2a   :  { %1006 = vmatpush3.msra.mxu0 %v67_v12  ;;  %1053 = vmatpush3.msra.mxu1 %v181_v13  ;;  %v198_v46 = vrot.slane %v1468_v43, 1  ;;  %v1482_v48 = vld [vmem:[%s1667_s0 + $0x20] sm:$0xff]  ;;  %v314_v49 = vld [vmem:[#allocation2 + $0x158] sm:$0xff]  ;;  %v313_v52 = vld [vmem:[#allocation2 + $0x150] sm:$0xff]  ;;  %v325_v10 = vrot.slane %v1468_v43, 2 }
  0x2b   :  { %1007 = vmatprep.subr.mxu0 %v1357_v0  ;;  %1054 = vmatprep.subr.mxu1 %v1357_v0  ;;  %v197_v45 = vsel %vm192_vm1, %v194_v35, %v196_v41  ;;  %v200_v51 = vrot.slane %v1482_v48, 1  ;;  %v312_v53 = vld [vmem:[#allocation2 + $0x148] sm:$0xff]  ;;  %v311_v55 = vld [vmem:[#allocation2 + $0x140] sm:$0xff]  ;;  %v310_v56 = vld [vmem:[#allocation2 + $0x138] sm:$0xff]  ;;  %v324_v11 = vsel %vm319_vm2, %v321_v5, %v323_v8  ;;  %v327_v12 = vrot.slane %v1482_v48, 2 }
  0x2c   :  { %1008 = vmatpush3.msra.mxu0 %v66_v14  ;;  %1055 = vmatpush3.msra.mxu1 %v180_v15  ;;  %v199_v50 = vsel %vm192_vm1, %v196_v41, %v198_v46  ;;  %v309_v57 = vld [vmem:[#allocation2 + $0x130] sm:$0xff]  ;;  %v434_v58 = vld [vmem:[%s1668_s1] sm:$0xff]  ;;  %v308_v60 = vld [vmem:[#allocation2 + $0x128] sm:$0xff]  ;;  %v326_v13 = vsel %vm319_vm2, %v323_v8, %v325_v10 }
  0x2d   :  { %1009 = vmatprep.subr.mxu0 %v1357_v0  ;;  %1056 = vmatprep.subr.mxu1 %v1357_v0  ;;  %v201_v54 = vsel %vm192_vm1, %v198_v46, %v200_v51  ;;  %v436_v59 = vld [vmem:[%s1668_s1 + $0x10] sm:$0xff]  ;;  %v307_v61 = vld [vmem:[#allocation2 + $0x120] sm:$0xff]  ;;  %v435_v62 = vld [vmem:[%s1668_s1 + $0x8] sm:$0xff]  ;;  %v328_v14 = vsel %vm319_vm2, %v325_v10, %v327_v12 }
  0x2e   :  { %1010 = vmatpush3.msra.mxu0 %v65_v16  ;;  %1057 = vmatpush3.msra.mxu1 %v179_v17  ;;  %v437_v63 = vld [vmem:[%s1668_s1 + $0x18] sm:$0xff]  ;;  %v305_v2 = vld [vmem:[#allocation2 + $0x110] sm:$0xff]  ;;  %v438_v3 = vld [vmem:[%s1668_s1 + $0x20] sm:$0x3f] }
  0x2f   :  { %1011 = vmatprep.subr.mxu0 %v1357_v0  ;;  %1058 = vmatprep.subr.mxu1 %v1357_v0  ;;  %v306_v1 = vld [vmem:[#allocation2 + $0x118] sm:$0xff]  ;;  %v304_v6 = vld [vmem:[#allocation2 + $0x108] sm:$0xff]  ;;  %v303_v7 = vld [vmem:[#allocation2 + $0x100] sm:$0xff] }
  0x30   :  { %1012 = vmatpush3.msra.mxu0 %v64_v18  ;;  %1059 = vmatpush3.msra.mxu1 %v178_v19  ;;  %v484_v15 = vld [vmem:[#allocation5 + $0x78] sm:$0xff]  ;;  %v483_v16 = vld [vmem:[#allocation5 + $0x70] sm:$0xff]  ;;  %v482_v17 = vld [vmem:[#allocation5 + $0x68] sm:$0xff] }
  0x31   :  { %1013 = vmatprep.subr.mxu0 %v1357_v0  ;;  %1060 = vmatprep.subr.mxu1 %v1357_v0  ;;  %v598_v18 = vld [vmem:[#allocation5 + $0xf8] sm:$0xff]  ;;  %v597_v19 = vld [vmem:[#allocation5 + $0xf0] sm:$0xff]  ;;  %v473_v35 = vld [vmem:[#allocation5 + $0x20] sm:$0xff] }
  0x32   :  { %1014 = vmatpush3.msra.mxu0 %v63_v20  ;;  %1061 = vmatpush3.msra.mxu1 %v177_v21  ;;  %v481_v20 = vld [vmem:[#allocation5 + $0x60] sm:$0xff]  ;;  %v480_v21 = vld [vmem:[#allocation5 + $0x58] sm:$0xff] }
  0x33   :  { %1015 = vmatprep.subr.mxu0 %v1357_v0  ;;  %1062 = vmatprep.subr.mxu1 %v1357_v0  ;;  %v590_v33 = vld [vmem:[#allocation5 + $0xb8] sm:$0xff]  ;;  %v469_v41 = vld [vmem:[#allocation5] sm:$0xff] }
  0x34   :  { %1016 = vmatpush3.msra.mxu0 %v62_v22  ;;  %1063 = vmatpush3.msra.mxu1 %v176_v23  ;;  %v596_v22 = vld [vmem:[#allocation5 + $0xe8] sm:$0xff]  ;;  %v595_v23 = vld [vmem:[#allocation5 + $0xe0] sm:$0xff] }
  0x35   :  { %1017 = vmatprep.subr.mxu0 %v1357_v0  ;;  %1064 = vmatprep.subr.mxu1 %v1357_v0  ;;  %v583_v46 = vld [vmem:[#allocation5 + $0x80] sm:$0xff] }
  0x36   :  { %1018 = vmatpush3.msra.mxu0 %v61_v24  ;;  %1065 = vmatpush3.msra.mxu1 %v175_v25  ;;  %v479_v24 = vld [vmem:[#allocation5 + $0x50] sm:$0xff]  ;;  %v478_v25 = vld [vmem:[#allocation5 + $0x48] sm:$0xff]  ;;  %v867_v4 = vld [vmem:[%s1670_s3] ss:$0 sm:$0xff] }
  0x37   :  { %1019 = vmatprep.subr.mxu0 %v1357_v0  ;;  %1066 = vmatprep.subr.mxu1 %v1357_v0 }
  0x38   :  { %1020 = vmatpush3.msra.mxu0 %v60_v26  ;;  %1067 = vmatpush3.msra.mxu1 %v174_v27  ;;  %v594_v26 = vld [vmem:[#allocation5 + $0xd8] sm:$0xff]  ;;  %v593_v27 = vld [vmem:[#allocation5 + $0xd0] sm:$0xff] }
  0x39   :  { %1021 = vmatprep.subr.mxu0 %v1357_v0  ;;  %1068 = vmatprep.subr.mxu1 %v1357_v0 }
  0x3a   :  { %1022 = vmatpush3.msra.mxu0 %v59_v30  ;;  %1069 = vmatpush3.msra.mxu1 %v173_v31  ;;  %v592_v30 = vld [vmem:[#allocation5 + $0xc8] sm:$0xff]  ;;  %v591_v31 = vld [vmem:[#allocation5 + $0xc0] sm:$0xff] }
  0x3b   :  { %1023 = vmatprep.subr.mxu0 %v1357_v0  ;;  %1070 = vmatprep.subr.mxu1 %v1357_v0 }
  0x3c   :  { %1024 = vmatpush3.msra.mxu0 %v58_v32  ;;  %1071 = vmatpush3.msra.mxu1 %v172_v34  ;;  %v475_v32 = vld [vmem:[#allocation5 + $0x30] sm:$0xff]  ;;  %v474_v34 = vld [vmem:[#allocation5 + $0x28] sm:$0xff] }
  0x3d   :  { %1025 = vmatprep.subr.mxu0 %v1357_v0  ;;  %1072 = vmatprep.subr.mxu1 %v1357_v0 }
  0x3e   :  { %1026 = vmatpush3.msra.mxu0 %v57_v36  ;;  %1073 = vmatpush3.msra.mxu1 %v171_v37  ;;  %v472_v36 = vld [vmem:[#allocation5 + $0x18] sm:$0xff]  ;;  %v471_v37 = vld [vmem:[#allocation5 + $0x10] sm:$0xff] }
  0x3f   :  { %1028 = vmatmul.mubr.f32.vlgmr.msra.gmra.mxu0 %v1439_v28  ;;  %1089 = vmatprep.subr.mxu0 %v1357_v0  ;;  %v477_v28 = vld [vmem:[#allocation5 + $0x40] sm:$0xff] }
  0x40   :  { %1090 = vmatpush3.msra.mxu0 %v318_v39  ;;  %1075 = vmatmul.mubr.f32.vlgmr.msra.gmra.mxu1 %v195_v40  ;;  %v470_v39 = vld [vmem:[#allocation5 + $0x8] sm:$0xff] }
  0x41   :  { %1091 = vmatprep.subr.mxu0 %v1357_v0  ;;  %1030 = vmatprep.mubr.msk.f32.mxu0 %vm1358_vm0, %v1357_v0  ;;  %v588_v40 = vld [vmem:[#allocation5 + $0xa8] sm:$0xff] }
  0x42   :  { %1092 = vmatpush3.msra.mxu0 %v317_v42  ;;  %1077 = vmatprep.mubr.msk.f32.mxu1 %vm1358_vm0, %v1357_v0  ;;  %v587_v42 = vld [vmem:[#allocation5 + $0xa0] sm:$0xff] }
  0x43   :  { %1093 = vmatprep.subr.mxu0 %v1357_v0  ;;  %1031 = vmatmul.mubr.f32.gmra.mxu0 %v1444_v29  ;;  %v476_v29 = vld [vmem:[#allocation5 + $0x38] sm:$0xff] }
  0x44   :  { %1094 = vmatpush3.msra.mxu0 %v316_v44  ;;  %1033 = vmatprep.mubr.msk.f32.mxu0 %vm1358_vm0, %v1357_v0  ;;  %v585_v44 = vld [vmem:[#allocation5 + $0x90] sm:$0xff] }
  0x45   :  { %1095 = vmatprep.subr.mxu0 %v1357_v0  ;;  %1078 = vmatmul.mubr.f32.gmra.mxu1 %v197_v45  ;;  %v584_v45 = vld [vmem:[#allocation5 + $0x88] sm:$0xff] }
  0x46   :  { %1096 = vmatpush3.msra.mxu0 %v315_v47  ;;  %1080 = vmatprep.mubr.msk.f32.mxu1 %vm1358_vm0, %v1357_v0 }
  0x47   :  { %1097 = vmatprep.subr.mxu0 %v1357_v0  ;;  %1034 = vmatmul.mubr.f32.gmra.mxu0 %v1457_v38  ;;  %v589_v38 = vld [vmem:[#allocation5 + $0xb0] sm:$0xff] }
  0x48   :  { %1098 = vmatpush3.msra.mxu0 %v314_v49  ;;  %1036 = vmatprep.mubr.msk.f32.mxu0 %vm1358_vm0, %v1357_v0 }
  0x49   :  { %1099 = vmatprep.subr.mxu0 %v1357_v0  ;;  %1081 = vmatmul.mubr.f32.gmra.mxu1 %v199_v50 }
  0x4a   :  { %1100 = vmatpush3.msra.mxu0 %v313_v52  ;;  %1083 = vmatprep.mubr.msk.f32.mxu1 %vm1358_vm0, %v1357_v0 }
  0x4b   :  { %1101 = vmatprep.subr.mxu0 %v1357_v0  ;;  %1037 = vmatmul.mubr.f32.gmra.mxu0 %v1468_v43  ;;  %v586_v43 = vld [vmem:[#allocation5 + $0x98] sm:$0xff] }
  0x4c   :  { %1102 = vmatpush3.msra.mxu0 %v312_v53  ;;  %1039 = vmatprep.mubr.msk.f32.mxu0 %vm1358_vm0, %v1357_v0 }
  0x4d   :  { %1103 = vmatprep.subr.mxu0 %v1357_v0  ;;  %1084 = vmatmul.mubr.f32.gmra.mxu1 %v201_v54 }
  0x4e   :  { %1104 = vmatpush3.msra.mxu0 %v311_v55  ;;  %1086 = vmatprep.mubr.msk.f32.mxu1 %vm1358_vm0, %v1357_v0 }
  0x4f   :  { %1105 = vmatprep.subr.mxu0 %v1357_v0  ;;  %1040 = vmatmul.mubr.f32.gmra.mxu0 %v1482_v48 }
  0x50   :  { %1106 = vmatpush3.msra.mxu0 %v310_v56  ;;  %1121 = vmatprep.mubr.msk.f32.mxu0 %vm1358_vm0, %v1357_v0 }
  0x51   :  { %1107 = vmatprep.subr.mxu0 %v1357_v0  ;;  %1087 = vmatmul.mubr.f32.gmra.mxu1 %v200_v51 }
  0x52   :  { %1108 = vmatpush3.msra.mxu0 %v309_v57  ;;  %441 = vperm.xlu0 %1285, %v434_v58  }
  0x53   :  { %1109 = vmatprep.subr.mxu0 %v1357_v0  ;;  %451 = vperm.xlu1 %1286, %v436_v59  }
  0x54   :  { %1110 = vmatpush3.msra.mxu0 %v308_v60  ;;  %1136 = vmatprep.subr.mxu1 %v1357_v0 }
  0x55   :  { %1111 = vmatprep.subr.mxu0 %v1357_v0  ;;  %1168 = vmatprep.mubr.msk.f32.mxu1 %vm1358_vm0, %v1357_v0 }
  0x56   :  { %1112 = vmatpush3.msra.mxu0 %v307_v61  ;;  %446 = vperm.xlu0 %1285, %v435_v62  }
  0x57   :  { %1113 = vmatprep.subr.mxu0 %v1357_v0  ;;  %456 = vperm.xlu1 %1286, %v437_v63  }
  0x58   :  { %1114 = vmatpush3.msra.mxu0 %v306_v1  ;;  %1137 = vmatpush3.msra.mxu1 %v484_v15 }
  0x59   :  { %1115 = vmatprep.subr.mxu0 %v1357_v0  ;;  %1138 = vmatprep.subr.mxu1 %v1357_v0 }
  0x5a   :  { %1116 = vmatpush3.msra.mxu0 %v305_v2  ;;  %461 = vperm.xlu0 %1285, %v438_v3  }
  0x5b   :  { %1117 = vmatprep.subr.mxu0 %v1357_v0  ;;  %1139 = vmatpush3.msra.mxu1 %v483_v16 }
  0x5c   :  { %1118 = vmatpush3.msra.mxu0 %v304_v6  ;;  %1140 = vmatprep.subr.mxu1 %v1357_v0 }
  0x5d   :  { %1119 = vmatprep.subr.mxu0 %v1357_v0  ;;  %1141 = vmatpush3.msra.mxu1 %v482_v17 }
  0x5e   :  { %1120 = vmatpush3.msra.mxu0 %v303_v7  ;;  %1142 = vmatprep.subr.mxu1 %v1357_v0 }
  0x5f   :  { %1122 = vmatmul.mubr.f32.vlgmr.msra.gmra.mxu0 %v322_v9  ;;  %1183 = vmatprep.subr.mxu0 %v1357_v0 }
  0x60   :  { %1124 = vmatprep.mubr.msk.f32.mxu0 %vm1358_vm0, %v1357_v0  ;;  %1184 = vmatpush3.msra.mxu0 %v598_v18  ;;  %v729_v18 = vld [vmem:[#allocation5 + $0x178] sm:$0xff] }
  0x61   :  { %1185 = vmatprep.subr.mxu0 %v1357_v0  ;;  %1143 = vmatpush3.msra.mxu1 %v481_v20 }
  0x62   :  { %1186 = vmatpush3.msra.mxu0 %v597_v19  ;;  %1144 = vmatprep.subr.mxu1 %v1357_v0 }
  0x63   :  { %1125 = vmatmul.mubr.f32.gmra.mxu0 %v324_v11  ;;  %1187 = vmatprep.subr.mxu0 %v1357_v0 }
  0x64   :  { %1127 = vmatprep.mubr.msk.f32.mxu0 %vm1358_vm0, %v1357_v0  ;;  %1188 = vmatpush3.msra.mxu0 %v596_v22 }
  0x65   :  { %1189 = vmatprep.subr.mxu0 %v1357_v0  ;;  %1145 = vmatpush3.msra.mxu1 %v480_v21 }
  0x66   :  { %1190 = vmatpush3.msra.mxu0 %v595_v23  ;;  %1146 = vmatprep.subr.mxu1 %v1357_v0  ;;  %v728_v23 = vld [vmem:[#allocation5 + $0x170] sm:$0xff] }
  0x67   :  { %1128 = vmatmul.mubr.f32.gmra.mxu0 %v326_v13  ;;  %1191 = vmatprep.subr.mxu0 %v1357_v0 }
  0x68   :  { %1130 = vmatprep.mubr.msk.f32.mxu0 %vm1358_vm0, %v1357_v0  ;;  %1147 = vmatpush3.msra.mxu1 %v479_v24 }
  0x69   :  { %1192 = vmatpush3.msra.mxu0 %v594_v26  ;;  %1148 = vmatprep.subr.mxu1 %v1357_v0 }
  0x6a   :  { %1193 = vmatprep.subr.mxu0 %v1357_v0  ;;  %1149 = vmatpush3.msra.mxu1 %v478_v25 }
  0x6b   :  { %1131 = vmatmul.mubr.f32.gmra.mxu0 %v328_v14  ;;  %1150 = vmatprep.subr.mxu1 %v1357_v0 }
  0x6c   :  { %1133 = vmatprep.mubr.msk.f32.mxu0 %vm1358_vm0, %v1357_v0  ;;  %1194 = vmatpush3.msra.mxu0 %v593_v27 }
  0x6d   :  { %1195 = vmatprep.subr.mxu0 %v1357_v0  ;;  %1151 = vmatpush3.msra.mxu1 %v477_v28 }
  0x6e   :  { %1196 = vmatpush3.msra.mxu0 %v592_v30  ;;  %1152 = vmatprep.subr.mxu1 %v1357_v0 }
  0x6f   :  { %1134 = vmatmul.mubr.f32.gmra.mxu0 %v327_v12  ;;  %1197 = vmatprep.subr.mxu0 %v1357_v0 }
  0x70   :  { %1215 = vmatprep.mubr.msk.f32.mxu0 %vm1358_vm0, %v1357_v0  ;;  %1153 = vmatpush3.msra.mxu1 %v476_v29  ;;  %v727_v29 = vld [vmem:[#allocation5 + $0x168] sm:$0xff] }
  0x71   :  { %1198 = vmatpush3.msra.mxu0 %v591_v31  ;;  %1154 = vmatprep.subr.mxu1 %v1357_v0 }
  0x72   :  { %1199 = vmatprep.subr.mxu0 %v1357_v0  ;;  %1155 = vmatpush3.msra.mxu1 %v475_v32 }
  0x73   :  { %1200 = vmatpush3.msra.mxu0 %v590_v33  ;;  %1156 = vmatprep.subr.mxu1 %v1357_v0 }
  0x74   :  { %1201 = vmatprep.subr.mxu0 %v1357_v0  ;;  %1157 = vmatpush3.msra.mxu1 %v474_v34 }
  0x75   :  { %1158 = vmatprep.subr.mxu1 %v1357_v0  ;;  %1202 = vmatpush3.msra.mxu0 %v589_v38 }
  0x76   :  { %1159 = vmatpush3.msra.mxu1 %v473_v35  ;;  %1203 = vmatprep.subr.mxu0 %v1357_v0 }
  0x77   :  { %1160 = vmatprep.subr.mxu1 %v1357_v0  ;;  %1204 = vmatpush3.msra.mxu0 %v588_v40 }
  0x78   :  { %1161 = vmatpush3.msra.mxu1 %v472_v36  ;;  %1205 = vmatprep.subr.mxu0 %v1357_v0  ;;  %v726_v36 = vld [vmem:[#allocation5 + $0x160] sm:$0xff] }
  0x79   :  { %1162 = vmatprep.subr.mxu1 %v1357_v0  ;;  %1206 = vmatpush3.msra.mxu0 %v587_v42 }
  0x7a   :  { %1163 = vmatpush3.msra.mxu1 %v471_v37  ;;  %1207 = vmatprep.subr.mxu0 %v1357_v0 }
  0x7b   :  { %1164 = vmatprep.subr.mxu1 %v1357_v0  ;;  %1208 = vmatpush3.msra.mxu0 %v586_v43 }
  0x7c   :  { %1165 = vmatpush3.msra.mxu1 %v470_v39  ;;  %1209 = vmatprep.subr.mxu0 %v1357_v0 }
  0x7d   :  { %1166 = vmatprep.subr.mxu1 %v1357_v0  ;;  %1210 = vmatpush3.msra.mxu0 %v585_v44 }
  0x7e   :  { %1167 = vmatpush3.msra.mxu1 %v469_v41  ;;  %1211 = vmatprep.subr.mxu0 %v1357_v0  ;;  %v725_v41 = vld [vmem:[#allocation5 + $0x158] sm:$0xff] }
  0x7f   :  { %1230 = vmatprep.subr.mxu1 %v1357_v0  ;;  %1212 = vmatpush3.msra.mxu0 %v584_v45 }
  0x80   :  { %1213 = vmatprep.subr.mxu0 %v1357_v0 }
  0x81   :  { %1214 = vmatpush3.msra.mxu0 %v583_v46 }
  0xcd   :  { %v442_v10 = vpop.permute.xlu0 %441 }
  0xce   :  { %v452_v24 = vpop.permute.xlu1 %451 }
  0xd1   :  { %v447_v25 = vpop.permute.xlu0 %446 }
  0xd2   :  { %v457_v43 = vpop.permute.xlu1 %456 }
  0xff   :  { %v146_v47 = vpop.f32.mrf.mxu0 }
 0x100   :  { %v273_v48 = vpop.f32.mrf.mxu1  ;;  %v147_v5 = vadd.f32 %v867_v4, %v146_v47  ;;  %v724_v47 = vld [vmem:[#allocation5 + $0x150] sm:$0xff] }
 0x101   :  { %v1029_v49 = vpop.f32.mrf.mxu0 }
 0x102   :  { %v1076_v50 = vpop.f32.mrf.mxu1  ;;  %v297_v6 = vadd.f32 %v273_v48, %v147_v5  ;;  %v715_v5 = vld [vmem:[#allocation5 + $0x108] sm:$0xff] }
 0x103   :  { %v151_v51 = vpop.f32.mrf.mxu0 }
 0x104   :  { %v152_v7 = vadd.f32 %v867_v4, %v151_v51 }
 0x105   :  { %v1032_v52 = vpop.f32.mrf.mxu0  ;;  %v278_v53 = vpop.f32.mrf.mxu1 }
 0x106   :  { %v298_v13 = vadd.f32 %v278_v53, %v152_v7  ;;  %v723_v52 = vld [vmem:[#allocation5 + $0x148] sm:$0xff]  ;;  %v714_v7 = vld [vmem:[#allocation5 + $0x100] sm:$0xff] }
 0x107   :  { %v156_v54 = vpop.f32.mrf.mxu0  ;;  %v1079_v55 = vpop.f32.mrf.mxu1 }
 0x108   :  { %v157_v12 = vadd.f32 %v867_v4, %v156_v54 }
 0x109   :  { %v1035_v56 = vpop.f32.mrf.mxu0  ;;  %v283_v57 = vpop.f32.mrf.mxu1 }
 0x10a   :  { %v299_v21 = vadd.f32 %v283_v57, %v157_v12  ;;  %v722_v56 = vld [vmem:[#allocation5 + $0x140] sm:$0xff]  ;;  %v462_v57 = vpop.permute.xlu0 %461 }
 0x10b   :  { %v161_v58 = vpop.f32.mrf.mxu0  ;;  %v1082_v59 = vpop.f32.mrf.mxu1 }
 0x10c   :  { %v162_v19 = vadd.f32 %v867_v4, %v161_v58 }
 0x10d   :  { %v1038_v60 = vpop.f32.mrf.mxu0  ;;  %v288_v61 = vpop.f32.mrf.mxu1 }
 0x10e   :  { %v300_v30 = vadd.f32 %v288_v61, %v162_v19  ;;  %v721_v60 = vld [vmem:[#allocation5 + $0x138] sm:$0xff]  ;;  %v720_v61 = vld [vmem:[#allocation5 + $0x130] sm:$0xff] }
 0x10f   :  { %v166_v62 = vpop.f32.mrf.mxu0  ;;  %v1085_v63 = vpop.f32.mrf.mxu1 }
 0x110   :  { %v167_v32 = vadd.f32 %v867_v4, %v166_v62  ;;  %v716_v4 = vld [vmem:[#allocation5 + $0x110] sm:$0xff] }
 0x111   :  { %v1041_v1 = vpop.f32.mrf.mxu0  ;;  %v293_v2 = vpop.f32.mrf.mxu1 }
 0x112   :  { %v301_v44 = vadd.f32 %v293_v2, %v167_v32  ;;  %v719_v1 = vld [vmem:[#allocation5 + $0x128] sm:$0xff]  ;;  %v718_v2 = vld [vmem:[#allocation5 + $0x120] sm:$0xff] }
 0x113   :  { %v1088_v3 = vpop.f32.mrf.mxu1 }
 0x114   :  { %v717_v3 = vld [vmem:[#allocation5 + $0x118] sm:$0xff] }
 0x11f   :  { %v400_v8 = vpop.f32.mrf.mxu0 }
 0x120   :  { %v424_v9 = vadd.f32 %v400_v8, %v297_v6 }
 0x121   :  { %v1123_v11 = vpop.f32.mrf.mxu0 }
 0x122   :  { %v429_v14 = vmax.f32 %v424_v9, 0.0 }
 0x123   :  { %v405_v15 = vpop.f32.mrf.mxu0 }
 0x124   :  { %v1589_v16 = vmul.f32 %v442_v10, %v429_v14  ;;  %v425_v17 = vadd.f32 %v405_v15, %v298_v13 }
 0x125   :  { %v1126_v20 = vpop.f32.mrf.mxu0 }
 0x126   :  { %v430_v22 = vmax.f32 %v425_v17, 0.0  ;;  %1169 = vmatmul.mubr.f32.vlgmr.msra.gmra.mxu1 %v1589_v16  ;;  %v604_v33 = vrot.slane %v1589_v16, 1  ;;  %v730_v8 = vrot.slane %v1589_v16, 2 }
 0x127   :  { %1231 = vmatpush3.msra.mxu1 %v729_v18  ;;  %v410_v26 = vpop.f32.mrf.mxu0  ;;  %1171 = vmatprep.mubr.msk.f32.mxu1 %vm1358_vm0, %v1357_v0 }
 0x128   :  { %v1594_v27 = vmul.f32 %v447_v25, %v430_v22  ;;  %v426_v28 = vadd.f32 %v410_v26, %v299_v21  ;;  %1232 = vmatprep.subr.mxu1 %v1357_v0 }
 0x129   :  { %1233 = vmatpush3.msra.mxu1 %v728_v23  ;;  %v1129_v31 = vpop.f32.mrf.mxu0 }
 0x12a   :  { %v605_v34 = vrot.slane %v1594_v27, 1  ;;  %v431_v35 = vmax.f32 %v426_v28, 0.0  ;;  %1234 = vmatprep.subr.mxu1 %v1357_v0  ;;  %1172 = vmatmul.mubr.f32.gmra.mxu1 %v1594_v27  ;;  %v731_v6 = vrot.slane %v1594_v27, 2 }
 0x12b   :  { %1235 = vmatpush3.msra.mxu1 %v727_v29  ;;  %v415_v37 = vpop.f32.mrf.mxu0  ;;  %1174 = vmatprep.mubr.msk.f32.mxu1 %vm1358_vm0, %v1357_v0 }
 0x12c   :  { %v1603_v38 = vmul.f32 %v452_v24, %v431_v35  ;;  %v427_v39 = vadd.f32 %v415_v37, %v300_v30  ;;  %1236 = vmatprep.subr.mxu1 %v1357_v0  ;;  %v606_v40 = vsel %vm192_vm1, %v604_v33, %v605_v34  ;;  %v732_v10 = vsel %vm319_vm2, %v730_v8, %v731_v6  ;;  %v868_v35 = vld [vmem:[%s1672_s5] ss:$0 sm:$0xff]  ;;  %s1360_s5 = smov [#allocation7]  }
 0x12d   :  { %1237 = vmatpush3.msra.mxu1 %v726_v36  ;;  %v1132_v42 = vpop.f32.mrf.mxu0  ;;  %1216 = vmatmul.mubr.f32.vlgmr.msra.gmra.mxu0 %v606_v40  ;;  %s854_s30 = sshll.u32 %s1360_s5, 4  ;;  %s855_s30 = int_to_ptr.vmem [resolvable:$true] %s854_s30 }
 0x12e   :  { %v607_v45 = vrot.slane %v1603_v38, 1  ;;  %v432_v46 = vmax.f32 %v427_v39, 0.0  ;;  %1238 = vmatprep.subr.mxu1 %v1357_v0  ;;  %1175 = vmatmul.mubr.f32.gmra.mxu1 %v1603_v38  ;;  %v733_v9 = vrot.slane %v1603_v38, 2  ;;  %s1327_s7 = scalar_lea.vmem %s855_s30, 512  ;;  %p1332_p11 = scmp.lt.s32.totalorder %s855_s30, %s855_s30 }
 0x12f   :  { %1239 = vmatpush3.msra.mxu1 %v725_v41  ;;  %v420_v48 = vpop.f32.mrf.mxu0  ;;  %1218 = vmatprep.mubr.msk.f32.mxu0 %vm1358_vm0, %v1357_v0  ;;  %p1328_p10 = scmp.ne.s32.totalorder %s855_s30, %s1327_s7  ;;  %p1333_p12 = scmp.lt.s32.totalorder %s1327_s7, %s1327_s7 }
 0x130   :  { %v1612_v49 = vmul.f32 %v457_v43, %v432_v46  ;;  %v428_v50 = vadd.f32 %v420_v48, %v301_v44  ;;  %1240 = vmatprep.subr.mxu1 %v1357_v0  ;;  %1177 = vmatprep.mubr.msk.f32.mxu1 %vm1358_vm0, %v1357_v0  ;;  %v608_v51 = vsel %vm192_vm1, %v605_v34, %v607_v45 }
 0x131   :  { %1241 = vmatpush3.msra.mxu1 %v724_v47  ;;  %1219 = vmatmul.mubr.f32.gmra.mxu0 %v608_v51  ;;  %v1135_v53 = vpop.f32.mrf.mxu0  ;;  %v734_v12 = vsel %vm319_vm2, %v731_v6, %v733_v9  ;;  %p1334_p13 = por %p1333_p12, %p1332_p11 }
 0x132   :  { %v609_v54 = vrot.slane %v1612_v49, 1  ;;  %v433_v55 = vmax.f32 %v428_v50, 0.0  ;;  %1242 = vmatprep.subr.mxu1 %v1357_v0  ;;  %1178 = vmatmul.mubr.f32.gmra.mxu1 %v1612_v49  ;;  %v735_v11 = vrot.slane %v1612_v49, 2 }
 0x133   :  { %1243 = vmatpush3.msra.mxu1 %v723_v52  ;;  %1221 = vmatprep.mubr.msk.f32.mxu0 %vm1358_vm0, %v1357_v0  ;;  %p1335_p0 = pnand %p1334_p13, %p1328_p10 }
 0x134   :  { %v468_v58 = vmul.f32 %v462_v57, %v433_v55  ;;  %1244 = vmatprep.subr.mxu1 %v1357_v0  ;;  %1180 = vmatprep.mubr.msk.f32.mxu1 %vm1358_vm0, %v1357_v0  ;;  %v610_v59 = vsel %vm192_vm1, %v607_v45, %v609_v54  ;;  %v736_v13 = vsel %vm319_vm2, %v733_v9, %v735_v11 }
 0x135   :  { %1245 = vmatpush3.msra.mxu1 %v722_v56  ;;  %1222 = vmatmul.mubr.f32.gmra.mxu0 %v610_v59 }
 0x136   :  { %1246 = vmatprep.subr.mxu1 %v1357_v0  ;;  %1181 = vmatmul.mubr.f32.gmra.mxu1 %v468_v58  ;;  %v611_v62 = vrot.slane %v468_v58, 1  ;;  %v737_v14 = vrot.slane %v468_v58, 2 }
 0x137   :  { %1247 = vmatpush3.msra.mxu1 %v721_v60  ;;  %1224 = vmatprep.mubr.msk.f32.mxu0 %vm1358_vm0, %v1357_v0 }
 0x138   :  { %1248 = vmatprep.subr.mxu1 %v1357_v0  ;;  %v612_v63 = vsel %vm192_vm1, %v609_v54, %v611_v62  ;;  %1262 = vmatprep.mubr.msk.f32.mxu1 %vm1358_vm0, %v1357_v0  ;;  %v738_v15 = vsel %vm319_vm2, %v735_v11, %v737_v14 }
 0x139   :  { %1249 = vmatpush3.msra.mxu1 %v720_v61  ;;  %1225 = vmatmul.mubr.f32.gmra.mxu0 %v612_v63 }
 0x13a   :  { %1250 = vmatprep.subr.mxu1 %v1357_v0  ;;  %1227 = vmatprep.mubr.msk.f32.mxu0 %vm1358_vm0, %v1357_v0 }
 0x13b   :  { %1251 = vmatpush3.msra.mxu1 %v719_v1 }
 0x13c   :  { %1252 = vmatprep.subr.mxu1 %v1357_v0 }
 0x13d   :  { %1253 = vmatpush3.msra.mxu1 %v718_v2  ;;  %1228 = vmatmul.mubr.f32.gmra.mxu0 %v611_v62 }
 0x13e   :  { %1254 = vmatprep.subr.mxu1 %v1357_v0 }
 0x13f   :  { %1255 = vmatpush3.msra.mxu1 %v717_v3 }
 0x140   :  { %1256 = vmatprep.subr.mxu1 %v1357_v0 }
 0x141   :  { %1257 = vmatpush3.msra.mxu1 %v716_v4 }
 0x142   :  { %1258 = vmatprep.subr.mxu1 %v1357_v0 }
 0x143   :  { %1259 = vmatpush3.msra.mxu1 %v715_v5 }
 0x144   :  { %1260 = vmatprep.subr.mxu1 %v1357_v0 }
 0x145   :  { %1261 = vmatpush3.msra.mxu1 %v714_v7 }
 0x146   :  { %1263 = vmatmul.mubr.f32.vlgmr.msra.gmra.mxu1 %v732_v10 }
 0x147   :  { %1265 = vmatprep.mubr.msk.f32.mxu1 %vm1358_vm0, %v1357_v0 }
 0x14a   :  { %1266 = vmatmul.mubr.f32.gmra.mxu1 %v734_v12 }
 0x14b   :  { %1268 = vmatprep.mubr.msk.f32.mxu1 %vm1358_vm0, %v1357_v0 }
 0x14e   :  { %1269 = vmatmul.mubr.f32.gmra.mxu1 %v736_v13 }
 0x14f   :  { %1271 = vmatprep.mubr.msk.f32.mxu1 %vm1358_vm0, %v1357_v0 }
 0x152   :  { %1272 = vmatmul.mubr.f32.gmra.mxu1 %v738_v15 }
 0x153   :  { %1274 = vmatprep.mubr.msk.f32.mxu1 %vm1358_vm0, %v1357_v0 }
 0x156   :  { %1275 = vmatmul.mubr.f32.gmra.mxu1 %v737_v14 }
 0x1e6   :  { %v558_v16 = vpop.f32.mrf.mxu1 }
 0x1e7   :  { %v559_v36 = vadd.f32 %v868_v35, %v558_v16 }
 0x1e8   :  { %v1170_v17 = vpop.f32.mrf.mxu1 }
 0x1ea   :  { %v563_v18 = vpop.f32.mrf.mxu1 }
 0x1eb   :  { %v564_v39 = vadd.f32 %v868_v35, %v563_v18 }
 0x1ec   :  { %v1173_v19 = vpop.f32.mrf.mxu1 }
 0x1ed   :  { %v684_v20 = vpop.f32.mrf.mxu0 }
 0x1ee   :  { %v568_v21 = vpop.f32.mrf.mxu1  ;;  %v708_v37 = vadd.f32 %v684_v20, %v559_v36 }
 0x1ef   :  { %v1217_v22 = vpop.f32.mrf.mxu0  ;;  %v569_v45 = vadd.f32 %v868_v35, %v568_v21 }
 0x1f0   :  { %v1176_v23 = vpop.f32.mrf.mxu1 }
 0x1f1   :  { %v689_v24 = vpop.f32.mrf.mxu0 }
 0x1f2   :  { %v573_v25 = vpop.f32.mrf.mxu1  ;;  %v709_v42 = vadd.f32 %v689_v24, %v564_v39 }
 0x1f3   :  { %v1220_v26 = vpop.f32.mrf.mxu0  ;;  %v574_v51 = vadd.f32 %v868_v35, %v573_v25 }
 0x1f4   :  { %v1179_v27 = vpop.f32.mrf.mxu1 }
 0x1f5   :  { %v694_v28 = vpop.f32.mrf.mxu0 }
 0x1f6   :  { %v578_v29 = vpop.f32.mrf.mxu1  ;;  %v710_v48 = vadd.f32 %v694_v28, %v569_v45 }
 0x1f7   :  { %v1223_v30 = vpop.f32.mrf.mxu0  ;;  %v579_v57 = vadd.f32 %v868_v35, %v578_v29 }
 0x1f8   :  { %v1182_v31 = vpop.f32.mrf.mxu1 }
 0x1f9   :  { %v699_v32 = vpop.f32.mrf.mxu0 }
 0x1fa   :  { %v711_v54 = vadd.f32 %v699_v32, %v574_v51 }
 0x1fb   :  { %v1226_v33 = vpop.f32.mrf.mxu0 }
 0x1fd   :  { %v704_v0 = vpop.f32.mrf.mxu0 }
 0x1fe   :  { %v712_v60 = vadd.f32 %v704_v0, %v579_v57 }
 0x1ff   :  { %v1229_v34 = vpop.f32.mrf.mxu0 }
 0x206   :  { %v810_v38 = vpop.f32.mrf.mxu1 }
 0x207   :  { %v834_v40 = vadd.f32 %v810_v38, %v708_v37 }
 0x208   :  { %v1264_v41 = vpop.f32.mrf.mxu1 }
 0x209   :  { %v839_v43 = vmax.f32 %v834_v40, 0.0 }
 0x20a   :  { %v815_v44 = vpop.f32.mrf.mxu1 }
 0x20b   :  { %844 = vst [vmem:[#allocation7] sm:$0xff] %v839_v43  ;;  %v835_v46 = vadd.f32 %v815_v44, %v709_v42 }
 0x20c   :  { %v1267_v47 = vpop.f32.mrf.mxu1 }
 0x20d   :  { %v840_v49 = vmax.f32 %v835_v46, 0.0 }
 0x20e   :  { %v820_v50 = vpop.f32.mrf.mxu1 }
 0x20f   :  { %845 = vst [vmem:[#allocation7 + $0x8] sm:$0xff] %v840_v49  ;;  %v836_v52 = vadd.f32 %v820_v50, %v710_v48 }
 0x210   :  { %v1270_v53 = vpop.f32.mrf.mxu1 }
 0x211   :  { %v841_v55 = vmax.f32 %v836_v52, 0.0 }
 0x212   :  { %v825_v56 = vpop.f32.mrf.mxu1 }
 0x213   :  { %846 = vst [vmem:[#allocation7 + $0xc] sm:$0xf0] %v841_v55  ;;  %v837_v58 = vadd.f32 %v825_v56, %v711_v54 }
 0x214   :  { %v1273_v59 = vpop.f32.mrf.mxu1 }
 0x215   :  { %v842_v61 = vmax.f32 %v837_v58, 0.0 }
 0x216   :  { %v830_v62 = vpop.f32.mrf.mxu1 }
 0x217   :  { %847 = vst [vmem:[#allocation7 + $0x14] sm:$0xff] %v842_v61  ;;  %v838_v63 = vadd.f32 %v830_v62, %v712_v60 }
 0x218   :  { %v1276_v1 = vpop.f32.mrf.mxu1 }
 0x219   :  { %v843_v2 = vmax.f32 %v838_v63, 0.0 }
 0x21b   :  { %848 = vst [vmem:[#allocation7 + $0x1c] sm:$0xf] %v843_v2 }
 0x21c   :  { %1338 = shalt.err (!%p1335_p0)
}
 0x21d   :  { %860 = dma.vmem_to_hbm [thread:$0]  %s855_s30, 512, %s1673_s6, [#allocation4], %s1354_s24, %s1354_s24, %s1355_s25  }
 0x21e   :  { %1351 = dma.done.wait [#allocation4], 512  }
 0x21f   :  { %1352 = vsyncadd [#allocation4], 4294966784 }
 0x220   :  { %864 = vsyncpa [#allocation3], 1 }
 0x221   :  { %865 = vsyncpa [#allocation6], 1 }
 0x222   :  { %866 = vsyncpa [#allocation4], 1 }

// kernel: tpu_custom_call.1
= control target key start
LH: loop header
LB: loop body
LE: loop exit
PB: predicated region body
PF: predicated region fallthrough
CT: control target
= control target key end

     0   :  { %11 = vsyncpa [#allocation3], 0  ;;  %s1667_s0 = inlined_call_operand.vmem [shape: f32[1,40,128], index: 0, kind: input, shape index: {}]   ;;  %s1668_s1 = inlined_call_operand.vmem [shape: f32[1,40,1], index: 1, kind: input, shape index: {}]   ;;  %s1669_s2 = inlined_call_operand.hbm [shape: f32[3,128,128], index: 2, kind: input, shape index: {}]   ;;  %s1670_s3 = inlined_call_operand.vmem [shape: f32[1,128], index: 3, kind: input, shape index: {}]   ;;  %s1671_s4 = inlined_call_operand.hbm [shape: f32[3,128,128], index: 4, kind: input, shape index: {}]   ;;  %s1672_s5 = inlined_call_operand.vmem [shape: f32[1,128], index: 5, kind: input, shape index: {}]   ;;  %s1673_s6 = inlined_call_operand.hbm [shape: f32[1,32,128], index: 6, kind: output, shape index: {}]  }
   0x1   :  { %12 = vsyncpa [#allocation6], 0 }
   0x2   :  { %13 = vsyncpa [#allocation4], 0  ;;  %s1353_s21 = smov [#allocation2]  }
   0x3   :  { %s23_s22 = sshll.u32 %s1353_s21, 4  ;;  %s24_s22 = int_to_ptr.vmem [resolvable:$true] %s23_s22 }
   0x4   :  { %s1295_s23 = scalar_lea.vmem %s24_s22, 6144  ;;  %p1300_p1 = scmp.lt.s32.totalorder %s24_s22, %s24_s22 }
   0x5   :  { %p1296_p0 = scmp.ne.s32.totalorder %s24_s22, %s1295_s23  ;;  %p1301_p2 = scmp.lt.s32.totalorder %s1295_s23, %s1295_s23 }
   0x7   :  { %p1302_p3 = por %p1301_p2, %p1300_p1 }
   0x9   :  { %p1303_p4 = pnand %p1302_p3, %p1296_p0 }
   0xb   :  { %1306 = shalt.err (!%p1303_p4)
}
   0xc   :  { %s1354_s24 = smov 128   ;;  %s1355_s25 = smov 8  }
   0xd   :  { %29 = dma.hbm_to_vmem [thread:$0]  %s1669_s2, 6144, %s24_s22, [#allocation3], %s1354_s24, %s1354_s24, %s1355_s25  }
   0xe   :  { %s1356_s28 = smov [#allocation5]  }
   0xf   :  { %s37_s29 = sshll.u32 %s1356_s28, 4  ;;  %s38_s29 = int_to_ptr.vmem [resolvable:$true] %s37_s29 }
  0x10   :  { %s1315_s30 = scalar_lea.vmem %s38_s29, 6144  ;;  %p1320_p6 = scmp.lt.s32.totalorder %s38_s29, %s38_s29 }
  0x11   :  { %p1316_p5 = scmp.ne.s32.totalorder %s38_s29, %s1315_s30  ;;  %p1321_p7 = scmp.lt.s32.totalorder %s1315_s30, %s1315_s30 }
  0x13   :  { %p1322_p8 = por %p1321_p7, %p1320_p6 }
  0x15   :  { %p1323_p9 = pnand %p1322_p8, %p1316_p5 }
  0x17   :  { %1326 = shalt.err (!%p1323_p9)
}
  0x18   :  { %43 = dma.hbm_to_vmem [thread:$0]  %s1671_s4, 6144, %s38_s29, [#allocation6], %s1354_s24, %s1354_s24, %s1355_s25  }
  0x19   :  { %1347 = dma.done.wait [#allocation3], 6144  }
  0x1a   :  { %1348 = vsyncadd [#allocation3], 4294961152 }
  0x1b   :  { %1349 = dma.done.wait [#allocation6], 6144  }
  0x1c   :  { %1350 = vsyncadd [#allocation6], 4294961152  ;;  %v1357_v0 = vmov 0.0   ;;  %vm1358_vm0 = vmmov 0   ;;  %v1359_v1 = vmov 0   ;;  %v72_v2 = vld [vmem:[#allocation2 + $0x78] sm:$0xff] }
  0x1d   :  { %995 = vmatprep.subr.mxu0 %v1357_v0  ;;  %1042 = vmatprep.subr.mxu1 %v1357_v0  ;;  %v71_v3 = vld [vmem:[#allocation2 + $0x70] sm:$0xff]  ;;  %v186_v4 = vld [vmem:[#allocation2 + $0xf8] sm:$0xff]  ;;  %v70_v6 = vld [vmem:[#allocation2 + $0x68] sm:$0xff]  ;;  %vm192_vm1 = vcmask 1046528   ;;  %vm319_vm2 = vcmask 1045504  }
  0x1e   :  { %1027 = vmatprep.mubr.msk.f32.mxu0 %vm1358_vm0, %v1357_v0  ;;  %1074 = vmatprep.mubr.msk.f32.mxu1 %vm1358_vm0, %v1357_v0  ;;  %v185_v5 = vld [vmem:[#allocation2 + $0xf0] sm:$0xff]  ;;  %v184_v7 = vld [vmem:[#allocation2 + $0xe8] sm:$0xff]  ;;  %v69_v8 = vld [vmem:[#allocation2 + $0x60] sm:$0xff] }
  0x1f   :  { %1285 = vset.pattern.permute.xlu0 %v1359_v1  ;;  %1286 = vset.pattern.permute.xlu1 %v1359_v1  ;;  %v183_v9 = vld [vmem:[#allocation2 + $0xe0] sm:$0xff]  ;;  %v68_v10 = vld [vmem:[#allocation2 + $0x58] sm:$0xff]  ;;  %v67_v12 = vld [vmem:[#allocation2 + $0x50] sm:$0xff] }
  0x20   :  { %996 = vmatpush3.msra.mxu0 %v72_v2  ;;  %1043 = vmatpush3.msra.mxu1 %v186_v4  ;;  %v182_v11 = vld [vmem:[#allocation2 + $0xd8] sm:$0xff]  ;;  %v181_v13 = vld [vmem:[#allocation2 + $0xd0] sm:$0xff]  ;;  %v66_v14 = vld [vmem:[#allocation2 + $0x48] sm:$0xff] }
  0x21   :  { %997 = vmatprep.subr.mxu0 %v1357_v0  ;;  %1044 = vmatprep.subr.mxu1 %v1357_v0  ;;  %v180_v15 = vld [vmem:[#allocation2 + $0xc8] sm:$0xff]  ;;  %v65_v16 = vld [vmem:[#allocation2 + $0x40] sm:$0xff]  ;;  %v64_v18 = vld [vmem:[#allocation2 + $0x38] sm:$0xff] }
  0x22   :  { %998 = vmatpush3.msra.mxu0 %v71_v3  ;;  %1045 = vmatpush3.msra.mxu1 %v185_v5  ;;  %v179_v17 = vld [vmem:[#allocation2 + $0xc0] sm:$0xff]  ;;  %v178_v19 = vld [vmem:[#allocation2 + $0xb8] sm:$0xff]  ;;  %v63_v20 = vld [vmem:[#allocation2 + $0x30] sm:$0xff] }
  0x23   :  { %999 = vmatprep.subr.mxu0 %v1357_v0  ;;  %1046 = vmatprep.subr.mxu1 %v1357_v0  ;;  %v177_v21 = vld [vmem:[#allocation2 + $0xb0] sm:$0xff]  ;;  %v62_v22 = vld [vmem:[#allocation2 + $0x28] sm:$0xff]  ;;  %v61_v24 = vld [vmem:[#allocation2 + $0x20] sm:$0xff] }
  0x24   :  { %1000 = vmatpush3.msra.mxu0 %v70_v6  ;;  %1047 = vmatpush3.msra.mxu1 %v184_v7  ;;  %v176_v23 = vld [vmem:[#allocation2 + $0xa8] sm:$0xff]  ;;  %v175_v25 = vld [vmem:[#allocation2 + $0xa0] sm:$0xff]  ;;  %v60_v26 = vld [vmem:[#allocation2 + $0x18] sm:$0xff] }
  0x25   :  { %1001 = vmatprep.subr.mxu0 %v1357_v0  ;;  %1048 = vmatprep.subr.mxu1 %v1357_v0  ;;  %v174_v27 = vld [vmem:[#allocation2 + $0x98] sm:$0xff]  ;;  %v1439_v28 = vld [vmem:[%s1667_s0] sm:$0xff]  ;;  %v1444_v29 = vld [vmem:[%s1667_s0 + $0x8] sm:$0xff] }
  0x26   :  { %1002 = vmatpush3.msra.mxu0 %v69_v8  ;;  %1049 = vmatpush3.msra.mxu1 %v183_v9  ;;  %v59_v30 = vld [vmem:[#allocation2 + $0x10] sm:$0xff]  ;;  %v58_v32 = vld [vmem:[#allocation2 + $0x8] sm:$0xff]  ;;  %v193_v33 = vrot.slane %v1439_v28, 1  ;;  %v194_v35 = vrot.slane %v1444_v29, 1  ;;  %v57_v36 = vld [vmem:[#allocation2] sm:$0xff]  ;;  %v320_v4 = vrot.slane %v1439_v28, 2 }
  0x27   :  { %1003 = vmatprep.subr.mxu0 %v1357_v0  ;;  %1050 = vmatprep.subr.mxu1 %v1357_v0  ;;  %v173_v31 = vld [vmem:[#allocation2 + $0x90] sm:$0xff]  ;;  %v172_v34 = vld [vmem:[#allocation2 + $0x88] sm:$0xff]  ;;  %v171_v37 = vld [vmem:[#allocation2 + $0x80] sm:$0xff]  ;;  %v321_v5 = vrot.slane %v1444_v29, 2 }
  0x28   :  { %1004 = vmatpush3.msra.mxu0 %v68_v10  ;;  %1051 = vmatpush3.msra.mxu1 %v182_v11  ;;  %v1457_v38 = vld [vmem:[%s1667_s0 + $0x10] sm:$0xff]  ;;  %v318_v39 = vld [vmem:[#allocation2 + $0x178] sm:$0xff]  ;;  %v195_v40 = vsel %vm192_vm1, %v193_v33, %v194_v35  ;;  %v316_v44 = vld [vmem:[#allocation2 + $0x168] sm:$0xff] }
  0x29   :  { %1005 = vmatprep.subr.mxu0 %v1357_v0  ;;  %1052 = vmatprep.subr.mxu1 %v1357_v0  ;;  %v196_v41 = vrot.slane %v1457_v38, 1  ;;  %v317_v42 = vld [vmem:[#allocation2 + $0x170] sm:$0xff]  ;;  %v1468_v43 = vld [vmem:[%s1667_s0 + $0x18] sm:$0xff]  ;;  %v315_v47 = vld [vmem:[#allocation2 + $0x160] sm:$0xff]  ;;  %v323_v8 = vrot.slane %v1457_v38, 2  ;;  %v322_v9 = vsel %vm319_vm2, %v320_v4, %v321_v5 }
  0x2a   :  { %1006 = vmatpush3.msra.mxu0 %v67_v12  ;;  %1053 = vmatpush3.msra.mxu1 %v181_v13  ;;  %v198_v46 = vrot.slane %v1468_v43, 1  ;;  %v1482_v48 = vld [vmem:[%s1667_s0 + $0x20] sm:$0xff]  ;;  %v314_v49 = vld [vmem:[#allocation2 + $0x158] sm:$0xff]  ;;  %v313_v52 = vld [vmem:[#allocation2 + $0x150] sm:$0xff]  ;;  %v325_v10 = vrot.slane %v1468_v43, 2 }
  0x2b   :  { %1007 = vmatprep.subr.mxu0 %v1357_v0  ;;  %1054 = vmatprep.subr.mxu1 %v1357_v0  ;;  %v197_v45 = vsel %vm192_vm1, %v194_v35, %v196_v41  ;;  %v200_v51 = vrot.slane %v1482_v48, 1  ;;  %v312_v53 = vld [vmem:[#allocation2 + $0x148] sm:$0xff]  ;;  %v311_v55 = vld [vmem:[#allocation2 + $0x140] sm:$0xff]  ;;  %v310_v56 = vld [vmem:[#allocation2 + $0x138] sm:$0xff]  ;;  %v324_v11 = vsel %vm319_vm2, %v321_v5, %v323_v8  ;;  %v327_v12 = vrot.slane %v1482_v48, 2 }
  0x2c   :  { %1008 = vmatpush3.msra.mxu0 %v66_v14  ;;  %1055 = vmatpush3.msra.mxu1 %v180_v15  ;;  %v199_v50 = vsel %vm192_vm1, %v196_v41, %v198_v46  ;;  %v309_v57 = vld [vmem:[#allocation2 + $0x130] sm:$0xff]  ;;  %v434_v58 = vld [vmem:[%s1668_s1] sm:$0xff]  ;;  %v308_v60 = vld [vmem:[#allocation2 + $0x128] sm:$0xff]  ;;  %v326_v13 = vsel %vm319_vm2, %v323_v8, %v325_v10 }
  0x2d   :  { %1009 = vmatprep.subr.mxu0 %v1357_v0  ;;  %1056 = vmatprep.subr.mxu1 %v1357_v0  ;;  %v201_v54 = vsel %vm192_vm1, %v198_v46, %v200_v51  ;;  %v436_v59 = vld [vmem:[%s1668_s1 + $0x10] sm:$0xff]  ;;  %v307_v61 = vld [vmem:[#allocation2 + $0x120] sm:$0xff]  ;;  %v435_v62 = vld [vmem:[%s1668_s1 + $0x8] sm:$0xff]  ;;  %v328_v14 = vsel %vm319_vm2, %v325_v10, %v327_v12 }
  0x2e   :  { %1010 = vmatpush3.msra.mxu0 %v65_v16  ;;  %1057 = vmatpush3.msra.mxu1 %v179_v17  ;;  %v437_v63 = vld [vmem:[%s1668_s1 + $0x18] sm:$0xff]  ;;  %v305_v2 = vld [vmem:[#allocation2 + $0x110] sm:$0xff]  ;;  %v438_v3 = vld [vmem:[%s1668_s1 + $0x20] sm:$0x3f] }
  0x2f   :  { %1011 = vmatprep.subr.mxu0 %v1357_v0  ;;  %1058 = vmatprep.subr.mxu1 %v1357_v0  ;;  %v306_v1 = vld [vmem:[#allocation2 + $0x118] sm:$0xff]  ;;  %v304_v6 = vld [vmem:[#allocation2 + $0x108] sm:$0xff]  ;;  %v303_v7 = vld [vmem:[#allocation2 + $0x100] sm:$0xff] }
  0x30   :  { %1012 = vmatpush3.msra.mxu0 %v64_v18  ;;  %1059 = vmatpush3.msra.mxu1 %v178_v19  ;;  %v484_v15 = vld [vmem:[#allocation5 + $0x78] sm:$0xff]  ;;  %v483_v16 = vld [vmem:[#allocation5 + $0x70] sm:$0xff]  ;;  %v482_v17 = vld [vmem:[#allocation5 + $0x68] sm:$0xff] }
  0x31   :  { %1013 = vmatprep.subr.mxu0 %v1357_v0  ;;  %1060 = vmatprep.subr.mxu1 %v1357_v0  ;;  %v598_v18 = vld [vmem:[#allocation5 + $0xf8] sm:$0xff]  ;;  %v597_v19 = vld [vmem:[#allocation5 + $0xf0] sm:$0xff]  ;;  %v473_v35 = vld [vmem:[#allocation5 + $0x20] sm:$0xff] }
  0x32   :  { %1014 = vmatpush3.msra.mxu0 %v63_v20  ;;  %1061 = vmatpush3.msra.mxu1 %v177_v21  ;;  %v481_v20 = vld [vmem:[#allocation5 + $0x60] sm:$0xff]  ;;  %v480_v21 = vld [vmem:[#allocation5 + $0x58] sm:$0xff] }
  0x33   :  { %1015 = vmatprep.subr.mxu0 %v1357_v0  ;;  %1062 = vmatprep.subr.mxu1 %v1357_v0  ;;  %v590_v33 = vld [vmem:[#allocation5 + $0xb8] sm:$0xff]  ;;  %v469_v41 = vld [vmem:[#allocation5] sm:$0xff] }
  0x34   :  { %1016 = vmatpush3.msra.mxu0 %v62_v22  ;;  %1063 = vmatpush3.msra.mxu1 %v176_v23  ;;  %v596_v22 = vld [vmem:[#allocation5 + $0xe8] sm:$0xff]  ;;  %v595_v23 = vld [vmem:[#allocation5 + $0xe0] sm:$0xff] }
  0x35   :  { %1017 = vmatprep.subr.mxu0 %v1357_v0  ;;  %1064 = vmatprep.subr.mxu1 %v1357_v0  ;;  %v583_v46 = vld [vmem:[#allocation5 + $0x80] sm:$0xff] }
  0x36   :  { %1018 = vmatpush3.msra.mxu0 %v61_v24  ;;  %1065 = vmatpush3.msra.mxu1 %v175_v25  ;;  %v479_v24 = vld [vmem:[#allocation5 + $0x50] sm:$0xff]  ;;  %v478_v25 = vld [vmem:[#allocation5 + $0x48] sm:$0xff]  ;;  %v867_v4 = vld [vmem:[%s1670_s3] ss:$0 sm:$0xff] }
  0x37   :  { %1019 = vmatprep.subr.mxu0 %v1357_v0  ;;  %1066 = vmatprep.subr.mxu1 %v1357_v0 }
  0x38   :  { %1020 = vmatpush3.msra.mxu0 %v60_v26  ;;  %1067 = vmatpush3.msra.mxu1 %v174_v27  ;;  %v594_v26 = vld [vmem:[#allocation5 + $0xd8] sm:$0xff]  ;;  %v593_v27 = vld [vmem:[#allocation5 + $0xd0] sm:$0xff] }
  0x39   :  { %1021 = vmatprep.subr.mxu0 %v1357_v0  ;;  %1068 = vmatprep.subr.mxu1 %v1357_v0 }
  0x3a   :  { %1022 = vmatpush3.msra.mxu0 %v59_v30  ;;  %1069 = vmatpush3.msra.mxu1 %v173_v31  ;;  %v592_v30 = vld [vmem:[#allocation5 + $0xc8] sm:$0xff]  ;;  %v591_v31 = vld [vmem:[#allocation5 + $0xc0] sm:$0xff] }
  0x3b   :  { %1023 = vmatprep.subr.mxu0 %v1357_v0  ;;  %1070 = vmatprep.subr.mxu1 %v1357_v0 }
  0x3c   :  { %1024 = vmatpush3.msra.mxu0 %v58_v32  ;;  %1071 = vmatpush3.msra.mxu1 %v172_v34  ;;  %v475_v32 = vld [vmem:[#allocation5 + $0x30] sm:$0xff]  ;;  %v474_v34 = vld [vmem:[#allocation5 + $0x28] sm:$0xff] }
  0x3d   :  { %1025 = vmatprep.subr.mxu0 %v1357_v0  ;;  %1072 = vmatprep.subr.mxu1 %v1357_v0 }
  0x3e   :  { %1026 = vmatpush3.msra.mxu0 %v57_v36  ;;  %1073 = vmatpush3.msra.mxu1 %v171_v37  ;;  %v472_v36 = vld [vmem:[#allocation5 + $0x18] sm:$0xff]  ;;  %v471_v37 = vld [vmem:[#allocation5 + $0x10] sm:$0xff] }
  0x3f   :  { %1028 = vmatmul.mubr.f32.vlgmr.msra.gmra.mxu0 %v1439_v28  ;;  %1089 = vmatprep.subr.mxu0 %v1357_v0  ;;  %v477_v28 = vld [vmem:[#allocation5 + $0x40] sm:$0xff] }
  0x40   :  { %1090 = vmatpush3.msra.mxu0 %v318_v39  ;;  %1075 = vmatmul.mubr.f32.vlgmr.msra.gmra.mxu1 %v195_v40  ;;  %v470_v39 = vld [vmem:[#allocation5 + $0x8] sm:$0xff] }
  0x41   :  { %1091 = vmatprep.subr.mxu0 %v1357_v0  ;;  %1030 = vmatprep.mubr.msk.f32.mxu0 %vm1358_vm0, %v1357_v0  ;;  %v588_v40 = vld [vmem:[#allocation5 + $0xa8] sm:$0xff] }
  0x42   :  { %1092 = vmatpush3.msra.mxu0 %v317_v42  ;;  %1077 = vmatprep.mubr.msk.f32.mxu1 %vm1358_vm0, %v1357_v0  ;;  %v587_v42 = vld [vmem:[#allocation5 + $0xa0] sm:$0xff] }
  0x43   :  { %1093 = vmatprep.subr.mxu0 %v1357_v0  ;;  %1031 = vmatmul.mubr.f32.gmra.mxu0 %v1444_v29  ;;  %v476_v29 = vld [vmem:[#allocation5 + $0x38] sm:$0xff] }
  0x44   :  { %1094 = vmatpush3.msra.mxu0 %v316_v44  ;;  %1033 = vmatprep.mubr.msk.f32.mxu0 %vm1358_vm0, %v1357_v0  ;;  %v585_v44 = vld [vmem:[#allocation5 + $0x90] sm:$0xff] }
  0x45   :  { %1095 = vmatprep.subr.mxu0 %v1357_v0  ;;  %1078 = vmatmul.mubr.f32.gmra.mxu1 %v197_v45  ;;  %v584_v45 = vld [vmem:[#allocation5 + $0x88] sm:$0xff] }
  0x46   :  { %1096 = vmatpush3.msra.mxu0 %v315_v47  ;;  %1080 = vmatprep.mubr.msk.f32.mxu1 %vm1358_vm0, %v1357_v0 }
  0x47   :  { %1097 = vmatprep.subr.mxu0 %v1357_v0  ;;  %1034 = vmatmul.mubr.f32.gmra.mxu0 %v1457_v38  ;;  %v589_v38 = vld [vmem:[#allocation5 + $0xb0] sm:$0xff] }
  0x48   :  { %1098 = vmatpush3.msra.mxu0 %v314_v49  ;;  %1036 = vmatprep.mubr.msk.f32.mxu0 %vm1358_vm0, %v1357_v0 }
  0x49   :  { %1099 = vmatprep.subr.mxu0 %v1357_v0  ;;  %1081 = vmatmul.mubr.f32.gmra.mxu1 %v199_v50 }
  0x4a   :  { %1100 = vmatpush3.msra.mxu0 %v313_v52  ;;  %1083 = vmatprep.mubr.msk.f32.mxu1 %vm1358_vm0, %v1357_v0 }
  0x4b   :  { %1101 = vmatprep.subr.mxu0 %v1357_v0  ;;  %1037 = vmatmul.mubr.f32.gmra.mxu0 %v1468_v43  ;;  %v586_v43 = vld [vmem:[#allocation5 + $0x98] sm:$0xff] }
  0x4c   :  { %1102 = vmatpush3.msra.mxu0 %v312_v53  ;;  %1039 = vmatprep.mubr.msk.f32.mxu0 %vm1358_vm0, %v1357_v0 }
  0x4d   :  { %1103 = vmatprep.subr.mxu0 %v1357_v0  ;;  %1084 = vmatmul.mubr.f32.gmra.mxu1 %v201_v54 }
  0x4e   :  { %1104 = vmatpush3.msra.mxu0 %v311_v55  ;;  %1086 = vmatprep.mubr.msk.f32.mxu1 %vm1358_vm0, %v1357_v0 }
  0x4f   :  { %1105 = vmatprep.subr.mxu0 %v1357_v0  ;;  %1040 = vmatmul.mubr.f32.gmra.mxu0 %v1482_v48 }
  0x50   :  { %1106 = vmatpush3.msra.mxu0 %v310_v56  ;;  %1121 = vmatprep.mubr.msk.f32.mxu0 %vm1358_vm0, %v1357_v0 }
  0x51   :  { %1107 = vmatprep.subr.mxu0 %v1357_v0  ;;  %1087 = vmatmul.mubr.f32.gmra.mxu1 %v200_v51 }
  0x52   :  { %1108 = vmatpush3.msra.mxu0 %v309_v57  ;;  %441 = vperm.xlu0 %1285, %v434_v58  }
  0x53   :  { %1109 = vmatprep.subr.mxu0 %v1357_v0  ;;  %451 = vperm.xlu1 %1286, %v436_v59  }
  0x54   :  { %1110 = vmatpush3.msra.mxu0 %v308_v60  ;;  %1136 = vmatprep.subr.mxu1 %v1357_v0 }
  0x55   :  { %1111 = vmatprep.subr.mxu0 %v1357_v0  ;;  %1168 = vmatprep.mubr.msk.f32.mxu1 %vm1358_vm0, %v1357_v0 }
  0x56   :  { %1112 = vmatpush3.msra.mxu0 %v307_v61  ;;  %446 = vperm.xlu0 %1285, %v435_v62  }
  0x57   :  { %1113 = vmatprep.subr.mxu0 %v1357_v0  ;;  %456 = vperm.xlu1 %1286, %v437_v63  }
  0x58   :  { %1114 = vmatpush3.msra.mxu0 %v306_v1  ;;  %1137 = vmatpush3.msra.mxu1 %v484_v15 }
  0x59   :  { %1115 = vmatprep.subr.mxu0 %v1357_v0  ;;  %1138 = vmatprep.subr.mxu1 %v1357_v0 }
  0x5a   :  { %1116 = vmatpush3.msra.mxu0 %v305_v2  ;;  %461 = vperm.xlu0 %1285, %v438_v3  }
  0x5b   :  { %1117 = vmatprep.subr.mxu0 %v1357_v0  ;;  %1139 = vmatpush3.msra.mxu1 %v483_v16 }
  0x5c   :  { %1118 = vmatpush3.msra.mxu0 %v304_v6  ;;  %1140 = vmatprep.subr.mxu1 %v1357_v0 }
  0x5d   :  { %1119 = vmatprep.subr.mxu0 %v1357_v0  ;;  %1141 = vmatpush3.msra.mxu1 %v482_v17 }
  0x5e   :  { %1120 = vmatpush3.msra.mxu0 %v303_v7  ;;  %1142 = vmatprep.subr.mxu1 %v1357_v0 }
  0x5f   :  { %1122 = vmatmul.mubr.f32.vlgmr.msra.gmra.mxu0 %v322_v9  ;;  %1183 = vmatprep.subr.mxu0 %v1357_v0 }
  0x60   :  { %1124 = vmatprep.mubr.msk.f32.mxu0 %vm1358_vm0, %v1357_v0  ;;  %1184 = vmatpush3.msra.mxu0 %v598_v18  ;;  %v729_v18 = vld [vmem:[#allocation5 + $0x178] sm:$0xff] }
  0x61   :  { %1185 = vmatprep.subr.mxu0 %v1357_v0  ;;  %1143 = vmatpush3.msra.mxu1 %v481_v20 }
  0x62   :  { %1186 = vmatpush3.msra.mxu0 %v597_v19  ;;  %1144 = vmatprep.subr.mxu1 %v1357_v0 }
  0x63   :  { %1125 = vmatmul.mubr.f32.gmra.mxu0 %v324_v11  ;;  %1187 = vmatprep.subr.mxu0 %v1357_v0 }
  0x64   :  { %1127 = vmatprep.mubr.msk.f32.mxu0 %vm1358_vm0, %v1357_v0  ;;  %1188 = vmatpush3.msra.mxu0 %v596_v22 }
  0x65   :  { %1189 = vmatprep.subr.mxu0 %v1357_v0  ;;  %1145 = vmatpush3.msra.mxu1 %v480_v21 }
  0x66   :  { %1190 = vmatpush3.msra.mxu0 %v595_v23  ;;  %1146 = vmatprep.subr.mxu1 %v1357_v0  ;;  %v728_v23 = vld [vmem:[#allocation5 + $0x170] sm:$0xff] }
  0x67   :  { %1128 = vmatmul.mubr.f32.gmra.mxu0 %v326_v13  ;;  %1191 = vmatprep.subr.mxu0 %v1357_v0 }
  0x68   :  { %1130 = vmatprep.mubr.msk.f32.mxu0 %vm1358_vm0, %v1357_v0  ;;  %1147 = vmatpush3.msra.mxu1 %v479_v24 }
  0x69   :  { %1192 = vmatpush3.msra.mxu0 %v594_v26  ;;  %1148 = vmatprep.subr.mxu1 %v1357_v0 }
  0x6a   :  { %1193 = vmatprep.subr.mxu0 %v1357_v0  ;;  %1149 = vmatpush3.msra.mxu1 %v478_v25 }
  0x6b   :  { %1131 = vmatmul.mubr.f32.gmra.mxu0 %v328_v14  ;;  %1150 = vmatprep.subr.mxu1 %v1357_v0 }
  0x6c   :  { %1133 = vmatprep.mubr.msk.f32.mxu0 %vm1358_vm0, %v1357_v0  ;;  %1194 = vmatpush3.msra.mxu0 %v593_v27 }
  0x6d   :  { %1195 = vmatprep.subr.mxu0 %v1357_v0  ;;  %1151 = vmatpush3.msra.mxu1 %v477_v28 }
  0x6e   :  { %1196 = vmatpush3.msra.mxu0 %v592_v30  ;;  %1152 = vmatprep.subr.mxu1 %v1357_v0 }
  0x6f   :  { %1134 = vmatmul.mubr.f32.gmra.mxu0 %v327_v12  ;;  %1197 = vmatprep.subr.mxu0 %v1357_v0 }
  0x70   :  { %1215 = vmatprep.mubr.msk.f32.mxu0 %vm1358_vm0, %v1357_v0  ;;  %1153 = vmatpush3.msra.mxu1 %v476_v29  ;;  %v727_v29 = vld [vmem:[#allocation5 + $0x168] sm:$0xff] }
  0x71   :  { %1198 = vmatpush3.msra.mxu0 %v591_v31  ;;  %1154 = vmatprep.subr.mxu1 %v1357_v0 }
  0x72   :  { %1199 = vmatprep.subr.mxu0 %v1357_v0  ;;  %1155 = vmatpush3.msra.mxu1 %v475_v32 }
  0x73   :  { %1200 = vmatpush3.msra.mxu0 %v590_v33  ;;  %1156 = vmatprep.subr.mxu1 %v1357_v0 }
  0x74   :  { %1201 = vmatprep.subr.mxu0 %v1357_v0  ;;  %1157 = vmatpush3.msra.mxu1 %v474_v34 }
  0x75   :  { %1158 = vmatprep.subr.mxu1 %v1357_v0  ;;  %1202 = vmatpush3.msra.mxu0 %v589_v38 }
  0x76   :  { %1159 = vmatpush3.msra.mxu1 %v473_v35  ;;  %1203 = vmatprep.subr.mxu0 %v1357_v0 }
  0x77   :  { %1160 = vmatprep.subr.mxu1 %v1357_v0  ;;  %1204 = vmatpush3.msra.mxu0 %v588_v40 }
  0x78   :  { %1161 = vmatpush3.msra.mxu1 %v472_v36  ;;  %1205 = vmatprep.subr.mxu0 %v1357_v0  ;;  %v726_v36 = vld [vmem:[#allocation5 + $0x160] sm:$0xff] }
  0x79   :  { %1162 = vmatprep.subr.mxu1 %v1357_v0  ;;  %1206 = vmatpush3.msra.mxu0 %v587_v42 }
  0x7a   :  { %1163 = vmatpush3.msra.mxu1 %v471_v37  ;;  %1207 = vmatprep.subr.mxu0 %v1357_v0 }
  0x7b   :  { %1164 = vmatprep.subr.mxu1 %v1357_v0  ;;  %1208 = vmatpush3.msra.mxu0 %v586_v43 }
  0x7c   :  { %1165 = vmatpush3.msra.mxu1 %v470_v39  ;;  %1209 = vmatprep.subr.mxu0 %v1357_v0 }
  0x7d   :  { %1166 = vmatprep.subr.mxu1 %v1357_v0  ;;  %1210 = vmatpush3.msra.mxu0 %v585_v44 }
  0x7e   :  { %1167 = vmatpush3.msra.mxu1 %v469_v41  ;;  %1211 = vmatprep.subr.mxu0 %v1357_v0  ;;  %v725_v41 = vld [vmem:[#allocation5 + $0x158] sm:$0xff] }
  0x7f   :  { %1230 = vmatprep.subr.mxu1 %v1357_v0  ;;  %1212 = vmatpush3.msra.mxu0 %v584_v45 }
  0x80   :  { %1213 = vmatprep.subr.mxu0 %v1357_v0 }
  0x81   :  { %1214 = vmatpush3.msra.mxu0 %v583_v46 }
  0xcd   :  { %v442_v10 = vpop.permute.xlu0 %441 }
  0xce   :  { %v452_v24 = vpop.permute.xlu1 %451 }
  0xd1   :  { %v447_v25 = vpop.permute.xlu0 %446 }
  0xd2   :  { %v457_v43 = vpop.permute.xlu1 %456 }
  0xff   :  { %v146_v47 = vpop.f32.mrf.mxu0 }
 0x100   :  { %v273_v48 = vpop.f32.mrf.mxu1  ;;  %v147_v5 = vadd.f32 %v867_v4, %v146_v47  ;;  %v724_v47 = vld [vmem:[#allocation5 + $0x150] sm:$0xff] }
 0x101   :  { %v1029_v49 = vpop.f32.mrf.mxu0 }
 0x102   :  { %v1076_v50 = vpop.f32.mrf.mxu1  ;;  %v297_v6 = vadd.f32 %v273_v48, %v147_v5  ;;  %v715_v5 = vld [vmem:[#allocation5 + $0x108] sm:$0xff] }
 0x103   :  { %v151_v51 = vpop.f32.mrf.mxu0 }
 0x104   :  { %v152_v7 = vadd.f32 %v867_v4, %v151_v51 }
 0x105   :  { %v1032_v52 = vpop.f32.mrf.mxu0  ;;  %v278_v53 = vpop.f32.mrf.mxu1 }
 0x106   :  { %v298_v13 = vadd.f32 %v278_v53, %v152_v7  ;;  %v723_v52 = vld [vmem:[#allocation5 + $0x148] sm:$0xff]  ;;  %v714_v7 = vld [vmem:[#allocation5 + $0x100] sm:$0xff] }
 0x107   :  { %v156_v54 = vpop.f32.mrf.mxu0  ;;  %v1079_v55 = vpop.f32.mrf.mxu1 }
 0x108   :  { %v157_v12 = vadd.f32 %v867_v4, %v156_v54 }
 0x109   :  { %v1035_v56 = vpop.f32.mrf.mxu0  ;;  %v283_v57 = vpop.f32.mrf.mxu1 }
 0x10a   :  { %v299_v21 = vadd.f32 %v283_v57, %v157_v12  ;;  %v722_v56 = vld [vmem:[#allocation5 + $0x140] sm:$0xff]  ;;  %v462_v57 = vpop.permute.xlu0 %461 }
 0x10b   :  { %v161_v58 = vpop.f32.mrf.mxu0  ;;  %v1082_v59 = vpop.f32.mrf.mxu1 }
 0x10c   :  { %v162_v19 = vadd.f32 %v867_v4, %v161_v58 }
 0x10d   :  { %v1038_v60 = vpop.f32.mrf.mxu0  ;;  %v288_v61 = vpop.f32.mrf.mxu1 }
 0x10e   :  { %v300_v30 = vadd.f32 %v288_v61, %v162_v19  ;;  %v721_v60 = vld [vmem:[#allocation5 + $0x138] sm:$0xff]  ;;  %v720_v61 = vld [vmem:[#allocation5 + $0x130] sm:$0xff] }
 0x10f   :  { %v166_v62 = vpop.f32.mrf.mxu0  ;;  %v1085_v63 = vpop.f32.mrf.mxu1 }
 0x110   :  { %v167_v32 = vadd.f32 %v867_v4, %v166_v62  ;;  %v716_v4 = vld [vmem:[#allocation5 + $0x110] sm:$0xff] }
 0x111   :  { %v1041_v1 = vpop.f32.mrf.mxu0  ;;  %v293_v2 = vpop.f32.mrf.mxu1 }
 0x112   :  { %v301_v44 = vadd.f32 %v293_v2, %v167_v32  ;;  %v719_v1 = vld [vmem:[#allocation5 + $0x128] sm:$0xff]  ;;  %v718_v2 = vld [vmem:[#allocation5 + $0x120] sm:$0xff] }
 0x113   :  { %v1088_v3 = vpop.f32.mrf.mxu1 }
 0x114   :  { %v717_v3 = vld [vmem:[#allocation5 + $0x118] sm:$0xff] }
 0x11f   :  { %v400_v8 = vpop.f32.mrf.mxu0 }
 0x120   :  { %v424_v9 = vadd.f32 %v400_v8, %v297_v6 }
 0x121   :  { %v1123_v11 = vpop.f32.mrf.mxu0 }
 0x122   :  { %v429_v14 = vmax.f32 %v424_v9, 0.0 }
 0x123   :  { %v405_v15 = vpop.f32.mrf.mxu0 }
 0x124   :  { %v1589_v16 = vmul.f32 %v442_v10, %v429_v14  ;;  %v425_v17 = vadd.f32 %v405_v15, %v298_v13 }
 0x125   :  { %v1126_v20 = vpop.f32.mrf.mxu0 }
 0x126   :  { %v430_v22 = vmax.f32 %v425_v17, 0.0  ;;  %1169 = vmatmul.mubr.f32.vlgmr.msra.gmra.mxu1 %v1589_v16  ;;  %v604_v33 = vrot.slane %v1589_v16, 1  ;;  %v730_v8 = vrot.slane %v1589_v16, 2 }
 0x127   :  { %1231 = vmatpush3.msra.mxu1 %v729_v18  ;;  %v410_v26 = vpop.f32.mrf.mxu0  ;;  %1171 = vmatprep.mubr.msk.f32.mxu1 %vm1358_vm0, %v1357_v0 }
 0x128   :  { %v1594_v27 = vmul.f32 %v447_v25, %v430_v22  ;;  %v426_v28 = vadd.f32 %v410_v26, %v299_v21  ;;  %1232 = vmatprep.subr.mxu1 %v1357_v0 }
 0x129   :  { %1233 = vmatpush3.msra.mxu1 %v728_v23  ;;  %v1129_v31 = vpop.f32.mrf.mxu0 }
 0x12a   :  { %v605_v34 = vrot.slane %v1594_v27, 1  ;;  %v431_v35 = vmax.f32 %v426_v28, 0.0  ;;  %1234 = vmatprep.subr.mxu1 %v1357_v0  ;;  %1172 = vmatmul.mubr.f32.gmra.mxu1 %v1594_v27  ;;  %v731_v6 = vrot.slane %v1594_v27, 2 }
 0x12b   :  { %1235 = vmatpush3.msra.mxu1 %v727_v29  ;;  %v415_v37 = vpop.f32.mrf.mxu0  ;;  %1174 = vmatprep.mubr.msk.f32.mxu1 %vm1358_vm0, %v1357_v0 }
 0x12c   :  { %v1603_v38 = vmul.f32 %v452_v24, %v431_v35  ;;  %v427_v39 = vadd.f32 %v415_v37, %v300_v30  ;;  %1236 = vmatprep.subr.mxu1 %v1357_v0  ;;  %v606_v40 = vsel %vm192_vm1, %v604_v33, %v605_v34  ;;  %v732_v10 = vsel %vm319_vm2, %v730_v8, %v731_v6  ;;  %v868_v35 = vld [vmem:[%s1672_s5] ss:$0 sm:$0xff]  ;;  %s1360_s5 = smov [#allocation7]  }
 0x12d   :  { %1237 = vmatpush3.msra.mxu1 %v726_v36  ;;  %v1132_v42 = vpop.f32.mrf.mxu0  ;;  %1216 = vmatmul.mubr.f32.vlgmr.msra.gmra.mxu0 %v606_v40  ;;  %s854_s30 = sshll.u32 %s1360_s5, 4  ;;  %s855_s30 = int_to_ptr.vmem [resolvable:$true] %s854_s30 }
 0x12e   :  { %v607_v45 = vrot.slane %v1603_v38, 1  ;;  %v432_v46 = vmax.f32 %v427_v39, 0.0  ;;  %1238 = vmatprep.subr.mxu1 %v1357_v0  ;;  %1175 = vmatmul.mubr.f32.gmra.mxu1 %v1603_v38  ;;  %v733_v9 = vrot.slane %v1603_v38, 2  ;;  %s1327_s7 = scalar_lea.vmem %s855_s30, 512  ;;  %p1332_p11 = scmp.lt.s32.totalorder %s855_s30, %s855_s30 }
 0x12f   :  { %1239 = vmatpush3.msra.mxu1 %v725_v41  ;;  %v420_v48 = vpop.f32.mrf.mxu0  ;;  %1218 = vmatprep.mubr.msk.f32.mxu0 %vm1358_vm0, %v1357_v0  ;;  %p1328_p10 = scmp.ne.s32.totalorder %s855_s30, %s1327_s7  ;;  %p1333_p12 = scmp.lt.s32.totalorder %s1327_s7, %s1327_s7 }
 0x130   :  { %v1612_v49 = vmul.f32 %v457_v43, %v432_v46  ;;  %v428_v50 = vadd.f32 %v420_v48, %v301_v44  ;;  %1240 = vmatprep.subr.mxu1 %v1357_v0  ;;  %1177 = vmatprep.mubr.msk.f32.mxu1 %vm1358_vm0, %v1357_v0  ;;  %v608_v51 = vsel %vm192_vm1, %v605_v34, %v607_v45 }
 0x131   :  { %1241 = vmatpush3.msra.mxu1 %v724_v47  ;;  %1219 = vmatmul.mubr.f32.gmra.mxu0 %v608_v51  ;;  %v1135_v53 = vpop.f32.mrf.mxu0  ;;  %v734_v12 = vsel %vm319_vm2, %v731_v6, %v733_v9  ;;  %p1334_p13 = por %p1333_p12, %p1332_p11 }
 0x132   :  { %v609_v54 = vrot.slane %v1612_v49, 1  ;;  %v433_v55 = vmax.f32 %v428_v50, 0.0  ;;  %1242 = vmatprep.subr.mxu1 %v1357_v0  ;;  %1178 = vmatmul.mubr.f32.gmra.mxu1 %v1612_v49  ;;  %v735_v11 = vrot.slane %v1612_v49, 2 }
 0x133   :  { %1243 = vmatpush3.msra.mxu1 %v723_v52  ;;  %1221 = vmatprep.mubr.msk.f32.mxu0 %vm1358_vm0, %v1357_v0  ;;  %p1335_p0 = pnand %p1334_p13, %p1328_p10 }
 0x134   :  { %v468_v58 = vmul.f32 %v462_v57, %v433_v55  ;;  %1244 = vmatprep.subr.mxu1 %v1357_v0  ;;  %1180 = vmatprep.mubr.msk.f32.mxu1 %vm1358_vm0, %v1357_v0  ;;  %v610_v59 = vsel %vm192_vm1, %v607_v45, %v609_v54  ;;  %v736_v13 = vsel %vm319_vm2, %v733_v9, %v735_v11 }
 0x135   :  { %1245 = vmatpush3.msra.mxu1 %v722_v56  ;;  %1222 = vmatmul.mubr.f32.gmra.mxu0 %v610_v59 }
 0x136   :  { %1246 = vmatprep.subr.mxu1 %v1357_v0  ;;  %1181 = vmatmul.mubr.f32.gmra.mxu1 %v468_v58  ;;  %v611_v62 = vrot.slane %v468_v58, 1  ;;  %v737_v14 = vrot.slane %v468_v58, 2 }
 0x137   :  { %1247 = vmatpush3.msra.mxu1 %v721_v60  ;;  %1224 = vmatprep.mubr.msk.f32.mxu0 %vm1358_vm0, %v1357_v0 }
 0x138   :  { %1248 = vmatprep.subr.mxu1 %v1357_v0  ;;  %v612_v63 = vsel %vm192_vm1, %v609_v54, %v611_v62  ;;  %1262 = vmatprep.mubr.msk.f32.mxu1 %vm1358_vm0, %v1357_v0  ;;  %v738_v15 = vsel %vm319_vm2, %v735_v11, %v737_v14 }
 0x139   :  { %1249 = vmatpush3.msra.mxu1 %v720_v61  ;;  %1225 = vmatmul.mubr.f32.gmra.mxu0 %v612_v63 }
 0x13a   :  { %1250 = vmatprep.subr.mxu1 %v1357_v0  ;;  %1227 = vmatprep.mubr.msk.f32.mxu0 %vm1358_vm0, %v1357_v0 }
 0x13b   :  { %1251 = vmatpush3.msra.mxu1 %v719_v1 }
 0x13c   :  { %1252 = vmatprep.subr.mxu1 %v1357_v0 }
 0x13d   :  { %1253 = vmatpush3.msra.mxu1 %v718_v2  ;;  %1228 = vmatmul.mubr.f32.gmra.mxu0 %v611_v62 }
 0x13e   :  { %1254 = vmatprep.subr.mxu1 %v1357_v0 }
 0x13f   :  { %1255 = vmatpush3.msra.mxu1 %v717_v3 }
 0x140   :  { %1256 = vmatprep.subr.mxu1 %v1357_v0 }
 0x141   :  { %1257 = vmatpush3.msra.mxu1 %v716_v4 }
 0x142   :  { %1258 = vmatprep.subr.mxu1 %v1357_v0 }
 0x143   :  { %1259 = vmatpush3.msra.mxu1 %v715_v5 }
 0x144   :  { %1260 = vmatprep.subr.mxu1 %v1357_v0 }
 0x145   :  { %1261 = vmatpush3.msra.mxu1 %v714_v7 }
 0x146   :  { %1263 = vmatmul.mubr.f32.vlgmr.msra.gmra.mxu1 %v732_v10 }
 0x147   :  { %1265 = vmatprep.mubr.msk.f32.mxu1 %vm1358_vm0, %v1357_v0 }
 0x14a   :  { %1266 = vmatmul.mubr.f32.gmra.mxu1 %v734_v12 }
 0x14b   :  { %1268 = vmatprep.mubr.msk.f32.mxu1 %vm1358_vm0, %v1357_v0 }
 0x14e   :  { %1269 = vmatmul.mubr.f32.gmra.mxu1 %v736_v13 }
 0x14f   :  { %1271 = vmatprep.mubr.msk.f32.mxu1 %vm1358_vm0, %v1357_v0 }
 0x152   :  { %1272 = vmatmul.mubr.f32.gmra.mxu1 %v738_v15 }
 0x153   :  { %1274 = vmatprep.mubr.msk.f32.mxu1 %vm1358_vm0, %v1357_v0 }
 0x156   :  { %1275 = vmatmul.mubr.f32.gmra.mxu1 %v737_v14 }
 0x1e6   :  { %v558_v16 = vpop.f32.mrf.mxu1 }
 0x1e7   :  { %v559_v36 = vadd.f32 %v868_v35, %v558_v16 }
 0x1e8   :  { %v1170_v17 = vpop.f32.mrf.mxu1 }
 0x1ea   :  { %v563_v18 = vpop.f32.mrf.mxu1 }
 0x1eb   :  { %v564_v39 = vadd.f32 %v868_v35, %v563_v18 }
 0x1ec   :  { %v1173_v19 = vpop.f32.mrf.mxu1 }
 0x1ed   :  { %v684_v20 = vpop.f32.mrf.mxu0 }
 0x1ee   :  { %v568_v21 = vpop.f32.mrf.mxu1  ;;  %v708_v37 = vadd.f32 %v684_v20, %v559_v36 }
 0x1ef   :  { %v1217_v22 = vpop.f32.mrf.mxu0  ;;  %v569_v45 = vadd.f32 %v868_v35, %v568_v21 }
 0x1f0   :  { %v1176_v23 = vpop.f32.mrf.mxu1 }
 0x1f1   :  { %v689_v24 = vpop.f32.mrf.mxu0 }
 0x1f2   :  { %v573_v25 = vpop.f32.mrf.mxu1  ;;  %v709_v42 = vadd.f32 %v689_v24, %v564_v39 }
 0x1f3   :  { %v1220_v26 = vpop.f32.mrf.mxu0  ;;  %v574_v51 = vadd.f32 %v868_v35, %v573_v25 }
 0x1f4   :  { %v1179_v27 = vpop.f32.mrf.mxu1 }
 0x1f5   :  { %v694_v28 = vpop.f32.mrf.mxu0 }
 0x1f6   :  { %v578_v29 = vpop.f32.mrf.mxu1  ;;  %v710_v48 = vadd.f32 %v694_v28, %v569_v45 }
 0x1f7   :  { %v1223_v30 = vpop.f32.mrf.mxu0  ;;  %v579_v57 = vadd.f32 %v868_v35, %v578_v29 }
 0x1f8   :  { %v1182_v31 = vpop.f32.mrf.mxu1 }
 0x1f9   :  { %v699_v32 = vpop.f32.mrf.mxu0 }
 0x1fa   :  { %v711_v54 = vadd.f32 %v699_v32, %v574_v51 }
 0x1fb   :  { %v1226_v33 = vpop.f32.mrf.mxu0 }
 0x1fd   :  { %v704_v0 = vpop.f32.mrf.mxu0 }
 0x1fe   :  { %v712_v60 = vadd.f32 %v704_v0, %v579_v57 }
 0x1ff   :  { %v1229_v34 = vpop.f32.mrf.mxu0 }
 0x206   :  { %v810_v38 = vpop.f32.mrf.mxu1 }
 0x207   :  { %v834_v40 = vadd.f32 %v810_v38, %v708_v37 }
 0x208   :  { %v1264_v41 = vpop.f32.mrf.mxu1 }
 0x209   :  { %v839_v43 = vmax.f32 %v834_v40, 0.0 }
 0x20a   :  { %v815_v44 = vpop.f32.mrf.mxu1 }
 0x20b   :  { %844 = vst [vmem:[#allocation7] sm:$0xff] %v839_v43  ;;  %v835_v46 = vadd.f32 %v815_v44, %v709_v42 }
 0x20c   :  { %v1267_v47 = vpop.f32.mrf.mxu1 }
 0x20d   :  { %v840_v49 = vmax.f32 %v835_v46, 0.0 }
 0x20e   :  { %v820_v50 = vpop.f32.mrf.mxu1 }
 0x20f   :  { %845 = vst [vmem:[#allocation7 + $0x8] sm:$0xff] %v840_v49  ;;  %v836_v52 = vadd.f32 %v820_v50, %v710_v48 }
 0x210   :  { %v1270_v53 = vpop.f32.mrf.mxu1 }
 0x211   :  { %v841_v55 = vmax.f32 %v836_v52, 0.0 }
 0x212   :  { %v825_v56 = vpop.f32.mrf.mxu1 }
 0x213   :  { %846 = vst [vmem:[#allocation7 + $0xc] sm:$0xf0] %v841_v55  ;;  %v837_v58 = vadd.f32 %v825_v56, %v711_v54 }
 0x214   :  { %v1273_v59 = vpop.f32.mrf.mxu1 }
 0x215   :  { %v842_v61 = vmax.f32 %v837_v58, 0.0 }
 0x216   :  { %v830_v62 = vpop.f32.mrf.mxu1 }
 0x217   :  { %847 = vst [vmem:[#allocation7 + $0x14] sm:$0xff] %v842_v61  ;;  %v838_v63 = vadd.f32 %v830_v62, %v712_v60 }
 0x218   :  { %v1276_v1 = vpop.f32.mrf.mxu1 }
 0x219   :  { %v843_v2 = vmax.f32 %v838_v63, 0.0 }
 0x21b   :  { %848 = vst [vmem:[#allocation7 + $0x1c] sm:$0xf] %v843_v2 }
 0x21c   :  { %1338 = shalt.err (!%p1335_p0)
}
 0x21d   :  { %860 = dma.vmem_to_hbm [thread:$0]  %s855_s30, 512, %s1673_s6, [#allocation4], %s1354_s24, %s1354_s24, %s1355_s25  }
 0x21e   :  { %1351 = dma.done.wait [#allocation4], 512  }
 0x21f   :  { %1352 = vsyncadd [#allocation4], 4294966784 }
 0x220   :  { %864 = vsyncpa [#allocation3], 1 }
 0x221   :  { %865 = vsyncpa [#allocation6], 1 }
 0x222   :  { %866 = vsyncpa [#allocation4], 1 }

</bundles_post_ra>
